<compile_context>
chip_gen: v6e
topology: v6e:2x2x1
jax: 0.10.0
libtpu: 0.0.40
codegen_flags: <defaults>
</compile_context>

<pallas_src>
import functools
import math

import jax
import jax.numpy as jnp
from jax.experimental import pallas as pl
from jax.experimental.pallas import tpu as pltpu


_VMEM_LIMIT = 48 * 1024 * 1024   # scoped VMEM budget: fits v5e/v6e/v7x


# ---------------------------------------------------------------------------
# Tiling helpers.  Every returned block dim is either a multiple of (8, 128)
# on the (sublane, lane) axis it is used for, or equals the full array dim,
# so all BlockSpecs stay Mosaic-legal.
# ---------------------------------------------------------------------------

def _pick_mn(dim, target=512):
    """Tile for a non-reduction (M/N) axis; target must be a multiple of 128."""
    if dim <= target:
        return dim
    c = (target // 128) * 128
    while c >= 128:
        if dim % c == 0:
            return c
        c -= 128
    return target            # non-dividing fallback: Pallas masks edge blocks


def _pick_k(dim, target=1024):
    """Tile for a reduction (K) axis: must divide exactly."""
    if dim <= target:
        return dim
    c = (target // 128) * 128
    while c >= 128:
        if dim % c == 0:
            return c
        c -= 128
    return dim               # fall back to whole K


def _pick_seq(dim, target=256):
    if dim <= target:
        return dim
    for c in (256, 128, 64, 32, 16, 8):
        if c <= target and dim % c == 0:
            return c
    return dim


def _gelu_tanh(x):
    c = math.sqrt(2.0 / math.pi)
    return 0.5 * x * (1.0 + jnp.tanh(c * (x + 0.044715 * x * x * x)))


# ---------------------------------------------------------------------------
# Kernel 1: fused LayerNorm -> matmul (+optional bias, GELU, trans_b)
# Grid (M//tm, N//tn); K (= n_embd) kept whole so LN sees the full row.
# LN is computed once per row tile (j == 0) into a VMEM scratch and reused
# for every N tile -> the N axis is "arbitrary", the M axis stays "parallel".
# ---------------------------------------------------------------------------

def _ln_linear_kernel(*refs, eps, activation, trans_w, has_bias):
    if has_bias:
        x_ref, g_ref, b_ref, w_ref, bias_ref, o_ref, xn_ref = refs
    else:
        x_ref, g_ref, b_ref, w_ref, o_ref, xn_ref = refs
        bias_ref = None

    @pl.when(pl.program_id(1) == 0)
    def _():
        x = x_ref[...].astype(jnp.float32)
        mean = jnp.mean(x, axis=-1, keepdims=True)
        var = jnp.mean(jnp.square(x - mean), axis=-1, keepdims=True)
        xn = (x - mean) * jax.lax.rsqrt(var + eps)
        xn = xn * g_ref[...].astype(jnp.float32) + b_ref[...].astype(jnp.float32)
        xn_ref[...] = xn.astype(xn_ref.dtype)

    xn = xn_ref[...]
    w = w_ref[...]
    if trans_w:   # weight is (N, K): contract on K (tied lm_head against wte)
        y = jax.lax.dot_general(xn, w, (((1,), (1,)), ((), ())),
                                preferred_element_type=jnp.float32)
    else:         # weight is (K, N)
        y = jnp.dot(xn, w, preferred_element_type=jnp.float32)

    if has_bias:
        y = y + bias_ref[...].astype(jnp.float32)
    if activation == "gelu":
        y = _gelu_tanh(y)
    o_ref[...] = y.astype(o_ref.dtype)


def ln_linear(x, g, bln, w, bias=None, *, activation=None, trans_w=False,
              out_dtype=jnp.bfloat16, eps=1e-5, tm_target=512, tn_target=512):
    M, K = x.shape
    N = w.shape[0] if trans_w else w.shape[1]
    tm = _pick_mn(M, tm_target)
    tn = _pick_mn(N, tn_target)
    grid = (pl.cdiv(M, tm), pl.cdiv(N, tn))
    has_bias = bias is not None

    if trans_w:
        w_spec = pl.BlockSpec((tn, K), lambda i, j: (j, 0))
    else:
        w_spec = pl.BlockSpec((K, tn), lambda i, j: (0, j))

    in_specs = [
        pl.BlockSpec((tm, K), lambda i, j: (i, 0)),   # x (fetched once per i)
        pl.BlockSpec((1, K), lambda i, j: (0, 0)),    # LN gamma
        pl.BlockSpec((1, K), lambda i, j: (0, 0)),    # LN beta
        w_spec,
    ]
    args = [x, g.reshape(1, K), bln.reshape(1, K), w]
    if has_bias:
        in_specs.append(pl.BlockSpec((1, tn), lambda i, j: (0, j)))
        args.append(bias.reshape(1, N))

    return pl.pallas_call(
        functools.partial(_ln_linear_kernel, eps=eps, activation=activation,
                          trans_w=trans_w, has_bias=has_bias),
        out_shape=jax.ShapeDtypeStruct((M, N), out_dtype),
        grid=grid,
        in_specs=in_specs,
        out_specs=pl.BlockSpec((tm, tn), lambda i, j: (i, j)),
        scratch_shapes=[pltpu.VMEM((tm, K), jnp.bfloat16)],   # cached LN(x)
        compiler_params=pltpu.CompilerParams(
            dimension_semantics=("parallel", "arbitrary"),
            vmem_limit_bytes=_VMEM_LIMIT),
    )(*args)


# ---------------------------------------------------------------------------
# Kernel 2: tiled matmul + bias + fused residual add (c_proj layers)
# Grid (M//tm, N//tn, K//tk), f32 VMEM accumulator, init/finalize via pl.when.
# tn = whole C, tm/tk targets 512/1024 (bigger tiles -> closer to roofline).
# ---------------------------------------------------------------------------

def _linear_res_kernel(x_ref, w_ref, bias_ref, res_ref, o_ref, acc_ref):
    k = pl.program_id(2)

    @pl.when(k == 0)
    def _():
        acc_ref[...] = jnp.zeros(acc_ref.shape, acc_ref.dtype)

    acc_ref[...] += jnp.dot(x_ref[...], w_ref[...],
                            preferred_element_type=jnp.float32)

    @pl.when(k == pl.num_programs(2) - 1)
    def _():
        y = acc_ref[...] + bias_ref[...].astype(jnp.float32) \
            + res_ref[...].astype(jnp.float32)
        o_ref[...] = y.astype(o_ref.dtype)


def linear_residual(x, w, bias, residual, *, out_dtype=jnp.bfloat16):
    M, K = x.shape
    N = w.shape[1]
    tm = _pick_mn(M, 512)
    tn = _pick_mn(N, 2048)       # whole C for both c_proj layers
    tk = _pick_k(K, 1024)
    grid = (pl.cdiv(M, tm), pl.cdiv(N, tn), pl.cdiv(K, tk))

    return pl.pallas_call(
        _linear_res_kernel,
        out_shape=jax.ShapeDtypeStruct((M, N), out_dtype),
        grid=grid,
        in_specs=[
            pl.BlockSpec((tm, tk), lambda i, j, k: (i, k)),
            pl.BlockSpec((tk, tn), lambda i, j, k: (k, j)),
            pl.BlockSpec((1, tn), lambda i, j, k: (0, j)),
            pl.BlockSpec((tm, tn), lambda i, j, k: (i, j)),   # residual
        ],
        out_specs=pl.BlockSpec((tm, tn), lambda i, j, k: (i, j)),
        scratch_shapes=[pltpu.VMEM((tm, tn), jnp.float32)],
        compiler_params=pltpu.CompilerParams(
            dimension_semantics=("parallel", "parallel", "arbitrary"),
            vmem_limit_bytes=_VMEM_LIMIT),
    )(x, w, bias.reshape(1, N), residual)


# ---------------------------------------------------------------------------
# Kernel 3: flash-style causal attention, reading straight from the fused
# (B, T, 3C) qkv buffer and writing a (B, T, C) output (no head transposes).
# Grid (B, head_groups, T//tq, T//tkv); each group packs `hg` heads so the
# q/k/v/out blocks are hg*D lanes wide (128 for GPT-2's D=64).  The K/V
# index_map clamps to min(j, i) so causally-masked tiles are never DMA'd;
# the causal mask is only built on diagonal tiles; scale is folded into q.
# ---------------------------------------------------------------------------

def _flash_attn_kernel(*refs, scale, tq, tkv, hg, D, C, split_kv):
    if split_kv:     # aligned path: separate q/k/v views, each (1, t, hg*D)
        q_ref, k_ref, v_ref, o_ref, m_ref, l_ref, acc_ref = refs
    else:            # fallback path: full-row q view + full-row kv view
        q_ref, kv_ref, o_ref, m_ref, l_ref, acc_ref = refs

    i = pl.program_id(2)
    j = pl.program_id(3)
    q_start = i * tq
    k_start = j * tkv

    @pl.when(j == 0)
    def _():
        m_ref[...] = jnp.full(m_ref.shape, -jnp.inf, m_ref.dtype)
        l_ref[...] = jnp.zeros(l_ref.shape, l_ref.dtype)
        acc_ref[...] = jnp.zeros(acc_ref.shape, acc_ref.dtype)

    def process(masked):
        if split_kv:
            q_all = q_ref[0]
            k_all = k_ref[0]
            v_all = v_ref[0]
        else:
            q_all = q_ref[0][:, 0:C]
            kv_row = kv_ref[0]
            k_all = kv_row[:, C:2 * C]
            v_all = kv_row[:, 2 * C:3 * C]

        if masked:   # only diagonal tiles pay for the iota/compare/select
            row = q_start + jax.lax.broadcasted_iota(jnp.int32, (tq, tkv), 0)
            col = k_start + jax.lax.broadcasted_iota(jnp.int32, (tq, tkv), 1)
            keep = col <= row

        for h in range(hg):
            hs, he = h * D, (h + 1) * D
            # fold 1/sqrt(D) into q (tq*D mults instead of tq*tkv)
            q = (q_all[:, hs:he].astype(jnp.float32) * scale).astype(q_all.dtype)
            k = k_all[:, hs:he]
            v = v_all[:, hs:he]
            s = jax.lax.dot_general(q, k, (((1,), (1,)), ((), ())),
                                    preferred_element_type=jnp.float32)
            if masked:
                s = jnp.where(keep, s, -jnp.inf)
            m_prev = m_ref[h]
            m_new = jnp.maximum(m_prev, jnp.max(s, axis=-1, keepdims=True))
            alpha = jnp.exp(m_prev - m_new)
            p = jnp.exp(s - m_new)
            l_ref[h] = alpha * l_ref[h] + jnp.sum(p, axis=-1, keepdims=True)
            acc_ref[h] = alpha * acc_ref[h] + jnp.dot(
                p.astype(v.dtype), v, preferred_element_type=jnp.float32)
            m_ref[h] = m_new

    @pl.when(j == i)       # diagonal tile: causal mask needed
    def _():
        process(masked=True)

    @pl.when(j < i)        # fully-visible past tile: no mask
    def _():
        process(masked=False)

    @pl.when(j == pl.num_programs(3) - 1)
    def _():
        outs = []
        for h in range(hg):
            inv = pl.reciprocal(l_ref[h], approx=True)
            outs.append(acc_ref[h] * inv)
        # single full-width (lane-dense) store of the whole head group
        o_ref[0] = jnp.concatenate(outs, axis=-1).astype(o_ref.dtype)


def _heads_per_group(n_head, D):
    """Smallest divisor hg of n_head with hg*D a multiple of 128 (else None)."""
    for hg in range(1, n_head + 1):
        if n_head % hg == 0 and (hg * D) % 128 == 0:
            return hg
    return None


def flash_attention_fused(qkv, B, T, C, n_head):
    """qkv: (B, T, 3C) bf16, layout [Q | K | V] on the last axis -> (B, T, C)."""
    D = C // n_head
    scale = 1.0 / math.sqrt(D)
    tq = _pick_seq(T, 256)
    tkv = tq                       # equal tiles: diagonal tiles never have
    #                                fully-masked rows -> no -inf - -inf NaNs
    hg = _heads_per_group(n_head, D)
    aligned = hg is not None
    if not aligned:
        hg = n_head                # fallback: all heads per step, full-row I/O
    W = hg * D
    G = n_head // hg
    grid = (B, G, T // tq, T // tkv)

    kernel = functools.partial(_flash_attn_kernel, scale=scale, tq=tq, tkv=tkv,
                               hg=hg, D=D, C=C, split_kv=aligned)

    if aligned:
        kq = C // W
        in_specs = [
            pl.BlockSpec((1, tq, W), lambda b, g, i, j: (b, i, g)),
            pl.BlockSpec((1, tkv, W),
                         lambda b, g, i, j: (b, jnp.minimum(j, i), kq + g)),
            pl.BlockSpec((1, tkv, W),
                         lambda b, g, i, j: (b, jnp.minimum(j, i), 2 * kq + g)),
        ]
        args = (qkv, qkv, qkv)
        out_spec = pl.BlockSpec((1, tq, W), lambda b, g, i, j: (b, i, g))
    else:
        # small / non-128-aligned head dims: take full 3C-wide rows (block last
        # dim equals the array dim -> always legal), slice q/k/v inside.
        in_specs = [
            pl.BlockSpec((1, tq, 3 * C), lambda b, g, i, j: (b, i, 0)),
            pl.BlockSpec((1, tkv, 3 * C),
                         lambda b, g, i, j: (b, jnp.minimum(j, i), 0)),
        ]
        args = (qkv, qkv)
        out_spec = pl.BlockSpec((1, tq, C), lambda b, g, i, j: (b, i, 0))

    return pl.pallas_call(
        kernel,
        out_shape=jax.ShapeDtypeStruct((B, T, C), qkv.dtype),
        grid=grid,
        in_specs=in_specs,
        out_specs=out_spec,
        scratch_shapes=[pltpu.VMEM((hg, tq, 1), jnp.float32),   # running max m
                        pltpu.VMEM((hg, tq, 1), jnp.float32),   # running sum l
                        pltpu.VMEM((hg, tq, D), jnp.float32)],  # output acc
        compiler_params=pltpu.CompilerParams(
            dimension_semantics=("parallel", "parallel", "parallel",
                                 "arbitrary"),
            vmem_limit_bytes=_VMEM_LIMIT),
    )(*args)


# ---------------------------------------------------------------------------
# Model glue (embeddings in plain JAX; all reshapes below are free merges)
# ---------------------------------------------------------------------------

def block_forward(p, x2, B, T, n_head):
    BT, C = x2.shape

    # ln_1 fused into the qkv projection; qkv stays in its fused (B,T,3C) form
    qkv = ln_linear(x2, p["ln1_g"], p["ln1_b"], p["attn_w"], p["attn_b"])
    qkv = qkv.reshape(B, T, 3 * C)

    # flash attention reads/writes head-aligned columns directly -> no
    # XLA head split/merge transposes.
    y = flash_attention_fused(qkv, B, T, C, n_head).reshape(BT, C)

    # attention c_proj with fused residual add
    x2 = linear_residual(y, p["attn_proj_w"], p["attn_proj_b"], x2)

    # ln_2 + c_fc + tanh-GELU fused, then c_proj with fused residual add
    h = ln_linear(x2, p["ln2_g"], p["ln2_b"], p["fc_w"], p["fc_b"],
                  activation="gelu")
    x2 = linear_residual(h, p["mlp_proj_w"], p["mlp_proj_b"], x2)
    return x2


def gpt_forward(params, idx, config, logits_dtype=jnp.bfloat16):
    B, T = idx.shape
    assert T <= config["block_size"]
    C = config["n_embd"]
    V = config["vocab_size"]

    wte = params["wte"]                       # (V, C), tied with lm_head
    wpe = params["wpe"]                       # (block_size, C)

    # TODO(synk): token/position embedding gather stays as an XLA jnp.take.
    tok_emb = jnp.take(wte, idx, axis=0).astype(jnp.float32)
    x = tok_emb + wpe[:T][None, :, :].astype(jnp.float32)
    x2 = x.reshape(B * T, C).astype(jnp.bfloat16)

    for blk in params["blocks"]:
        x2 = block_forward(blk, x2, B, T, config["n_head"])

    # ln_f fused with the weight-tied, bias-free lm_head: contract on C against
    # wte (V, C) directly (trans_w) -- no wte.T copy, no zero-bias add.
    # Large tm (1024) cuts wte HBM re-streaming; bf16 logits halve writeback.
    # TODO(synk): optional fp8 weight path for v7x not implemented.
    logits = ln_linear(x2, params["lnf_g"], params["lnf_b"], wte,
                       trans_w=True, out_dtype=logits_dtype,
                       tm_target=1024, tn_target=512)
    return logits.reshape(B, T, V)


# ---------------------------------------------------------------------------
# Deterministic parameter initialization (matches module __init__ shapes)
# ---------------------------------------------------------------------------

def init_params(key, config):
    V, C = config["vocab_size"], config["n_embd"]
    L = config["n_layer"]
    std = 0.02
    proj_std = 0.02 * (2 * L) ** -0.5          # NANOGPT_SCALE_INIT

    keys = iter(jax.random.split(key, 2 + 4 * L))

    def nrm(shape, s, dtype=jnp.bfloat16):
        return (s * jax.random.normal(next(keys), shape,
                                      dtype=jnp.float32)).astype(dtype)

    params = {
        "wte": nrm((V, C), std),
        "wpe": nrm((config["block_size"], C), std),
        "lnf_g": jnp.ones((C,), jnp.float32),
        "lnf_b": jnp.zeros((C,), jnp.float32),
        "blocks": [],
    }
    for _ in range(L):
        blk = {
            "ln1_g": jnp.ones((C,), jnp.float32),
            "ln1_b": jnp.zeros((C,), jnp.float32),
            "attn_w": nrm((C, 3 * C), std),
            "attn_b": jnp.zeros((3 * C,), jnp.float32),
            "attn_proj_w": nrm((C, C), proj_std),
            "attn_proj_b": jnp.zeros((C,), jnp.float32),
            "ln2_g": jnp.ones((C,), jnp.float32),
            "ln2_b": jnp.zeros((C,), jnp.float32),
            "fc_w": nrm((C, 4 * C), std),
            "fc_b": jnp.zeros((4 * C,), jnp.float32),
            "mlp_proj_w": nrm((4 * C, C), proj_std),
            "mlp_proj_b": jnp.zeros((C,), jnp.float32),
        }
        params["blocks"].append(blk)
    return params


# ---------------------------------------------------------------------------
# Main
# ---------------------------------------------------------------------------

if __name__ == "__main__":
    config = dict(vocab_size=64, block_size=16, n_layer=2, n_head=4, n_embd=32)
    B, T = 2, 8

    key = jax.random.PRNGKey(0)
    pkey, ikey = jax.random.split(key)
    params = init_params(pkey, config)
    idx = jax.random.randint(ikey, (B, T), 0, config["vocab_size"],
                             dtype=jnp.int32)

    fwd = jax.jit(lambda p, i: gpt_forward(p, i, config))
    logits = fwd(params, idx)
    logits = jax.block_until_ready(logits)

    assert logits.shape == (B, T, config["vocab_size"])
    assert bool(jnp.all(jnp.isfinite(logits.astype(jnp.float32))))
    # TODO(synk): cross-entropy loss path (targets != None) not implemented;
    # forward returns logits only.
    print("KERNEL_OK")
</pallas_src>

<mosaic_0001>
module attributes {stable_mosaic.version = 11 : i64} {
  func.func @_ln_linear_kernel(%arg0: i32, %arg1: i32, %arg2: memref<16x32xbf16, #tpu.memory_space<vmem>>, %arg3: memref<1x32xf32, #tpu.memory_space<vmem>>, %arg4: memref<1x32xf32, #tpu.memory_space<vmem>>, %arg5: memref<32x96xbf16, #tpu.memory_space<vmem>>, %arg6: memref<1x96xf32, #tpu.memory_space<vmem>>, %arg7: memref<16x96xbf16, #tpu.memory_space<vmem>>, %arg8: memref<16x32xbf16, #tpu.memory_space<vmem>>) attributes {dimension_semantics = [#tpu.dimension_semantics<parallel>, #tpu.dimension_semantics<arbitrary>], iteration_bounds = array<i64: 1, 1>, scalar_prefetch = 0 : i64, scratch_operands = 1 : i64, tpu.core_type = #tpu.core_type<tc>, window_params = [{transform_indices = @transform_0, window_bounds = array<i64: 16, 32>}, {pipeline_mode = #tpu.pipeline_mode<synchronous>, transform_indices = @transform_1, window_bounds = array<i64: 1, 32>}, {pipeline_mode = #tpu.pipeline_mode<synchronous>, transform_indices = @transform_2, window_bounds = array<i64: 1, 32>}, {transform_indices = @transform_3, window_bounds = array<i64: 32, 96>}, {transform_indices = @transform_4, window_bounds = array<i64: 1, 96>}, {transform_indices = @transform_5, window_bounds = array<i64: 16, 96>}]} {
    %c0_i32 = arith.constant 0 : i32
    %0 = arith.cmpi eq, %arg1, %c0_i32 : i32
    %1 = arith.extui %0 : i1 to i32
    %c0_i32_0 = arith.constant 0 : i32
    %2 = arith.cmpi ne, %1, %c0_i32_0 : i32
    scf.if %2 {
      %c0_8 = arith.constant 0 : index
      %c0_9 = arith.constant 0 : index
      %11 = vector.load %arg2[%c0_8, %c0_9] : memref<16x32xbf16, #tpu.memory_space<vmem>>, vector<16x32xbf16>
      %12 = arith.extf %11 : vector<16x32xbf16> to vector<16x32xf32>
      %cst_10 = arith.constant dense<0.000000e+00> : vector<16xf32>
      %13 = vector.multi_reduction <add>, %12, %cst_10 [1] : vector<16x32xf32> to vector<16xf32>
      %14 = vector.shape_cast %13 : vector<16xf32> to vector<16x1xf32>
      %cst_11 = arith.constant 3.200000e+01 : f32
      %15 = vector.broadcast %cst_11 : f32 to vector<16x1xf32>
      %16 = arith.divf %14, %15 : vector<16x1xf32>
      %17 = vector.broadcast %16 : vector<16x1xf32> to vector<16x32xf32>
      %18 = arith.subf %12, %17 : vector<16x32xf32>
      %19 = arith.mulf %18, %18 : vector<16x32xf32>
      %cst_12 = arith.constant dense<0.000000e+00> : vector<16xf32>
      %20 = vector.multi_reduction <add>, %19, %cst_12 [1] : vector<16x32xf32> to vector<16xf32>
      %21 = vector.shape_cast %20 : vector<16xf32> to vector<16x1xf32>
      %cst_13 = arith.constant 3.200000e+01 : f32
      %22 = vector.broadcast %cst_13 : f32 to vector<16x1xf32>
      %23 = arith.divf %21, %22 : vector<16x1xf32>
      %24 = vector.broadcast %16 : vector<16x1xf32> to vector<16x32xf32>
      %25 = arith.subf %12, %24 : vector<16x32xf32>
      %cst_14 = arith.constant 9.99999974E-6 : f32
      %26 = vector.broadcast %cst_14 : f32 to vector<16x1xf32>
      %27 = arith.addf %23, %26 : vector<16x1xf32>
      %28 = math.rsqrt %27 : vector<16x1xf32>
      %29 = vector.broadcast %28 : vector<16x1xf32> to vector<16x32xf32>
      %30 = arith.mulf %25, %29 : vector<16x32xf32>
      %c0_15 = arith.constant 0 : index
      %c0_16 = arith.constant 0 : index
      %31 = vector.load %arg3[%c0_15, %c0_16] : memref<1x32xf32, #tpu.memory_space<vmem>>, vector<1x32xf32>
      %32 = vector.broadcast %31 : vector<1x32xf32> to vector<16x32xf32>
      %33 = arith.mulf %30, %32 : vector<16x32xf32>
      %c0_17 = arith.constant 0 : index
      %c0_18 = arith.constant 0 : index
      %34 = vector.load %arg4[%c0_17, %c0_18] : memref<1x32xf32, #tpu.memory_space<vmem>>, vector<1x32xf32>
      %35 = vector.broadcast %34 : vector<1x32xf32> to vector<16x32xf32>
      %36 = arith.addf %33, %35 : vector<16x32xf32>
      %37 = arith.truncf %36 : vector<16x32xf32> to vector<16x32xbf16>
      %c0_19 = arith.constant 0 : index
      %c0_20 = arith.constant 0 : index
      %38 = vector.load %arg8[%c0_19, %c0_20] : memref<16x32xbf16, #tpu.memory_space<vmem>>, vector<16x32xbf16>
      tpu.vector_store %arg8[%c0_19, %c0_20], %37 {strides = array<i32>} : memref<16x32xbf16, #tpu.memory_space<vmem>>, vector<16x32xbf16>,
    } else {
    }
    %c0 = arith.constant 0 : index
    %c0_1 = arith.constant 0 : index
    %3 = vector.load %arg8[%c0, %c0_1] : memref<16x32xbf16, #tpu.memory_space<vmem>>, vector<16x32xbf16>
    %c0_2 = arith.constant 0 : index
    %c0_3 = arith.constant 0 : index
    %4 = vector.load %arg5[%c0_2, %c0_3] : memref<32x96xbf16, #tpu.memory_space<vmem>>, vector<32x96xbf16>
    %cst = arith.constant dense<0.000000e+00> : vector<16x96xf32>
    %5 = tpu.matmul %3, %4, %cst {dimension_numbers = #tpu.dot_dimension_numbers<[1], [0], [0], [1], [0, 0, 1, 1], [], []>} : vector<16x32xbf16>, vector<32x96xbf16>, vector<16x96xf32> -> vector<16x96xf32>
    %c0_4 = arith.constant 0 : index
    %c0_5 = arith.constant 0 : index
    %6 = vector.load %arg6[%c0_4, %c0_5] : memref<1x96xf32, #tpu.memory_space<vmem>>, vector<1x96xf32>
    %7 = vector.broadcast %6 : vector<1x96xf32> to vector<16x96xf32>
    %8 = arith.addf %5, %7 : vector<16x96xf32>
    %9 = arith.truncf %8 : vector<16x96xf32> to vector<16x96xbf16>
    %c0_6 = arith.constant 0 : index
    %c0_7 = arith.constant 0 : index
    %10 = vector.load %arg7[%c0_6, %c0_7] : memref<16x96xbf16, #tpu.memory_space<vmem>>, vector<16x96xbf16>
    tpu.vector_store %arg7[%c0_6, %c0_7], %9 {strides = array<i32>} : memref<16x96xbf16, #tpu.memory_space<vmem>>, vector<16x96xbf16>,
    return
  }
  func.func @transform_0(%arg0: i32, %arg1: i32) -> (i32, i32) {
    %c0_i32 = arith.constant 0 : i32
    %c0_i32_0 = arith.constant 0 : i32
    return %arg0, %c0_i32 : i32, i32
  }
  func.func @transform_1(%arg0: i32, %arg1: i32) -> (i32, i32) {
    %c0_i32 = arith.constant 0 : i32
    %c0_i32_0 = arith.constant 0 : i32
    %c0_i32_1 = arith.constant 0 : i32
    return %c0_i32, %c0_i32_0 : i32, i32
  }
  func.func @transform_2(%arg0: i32, %arg1: i32) -> (i32, i32) {
    %c0_i32 = arith.constant 0 : i32
    %c0_i32_0 = arith.constant 0 : i32
    %c0_i32_1 = arith.constant 0 : i32
    return %c0_i32, %c0_i32_0 : i32, i32
  }
  func.func @transform_3(%arg0: i32, %arg1: i32) -> (i32, i32) {
    %c0_i32 = arith.constant 0 : i32
    %c0_i32_0 = arith.constant 0 : i32
    return %c0_i32, %arg1 : i32, i32
  }
  func.func @transform_4(%arg0: i32, %arg1: i32) -> (i32, i32) {
    %c0_i32 = arith.constant 0 : i32
    %c0_i32_0 = arith.constant 0 : i32
    return %c0_i32, %arg1 : i32, i32
  }
  func.func @transform_5(%arg0: i32, %arg1: i32) -> (i32, i32) {
    %c0_i32 = arith.constant 0 : i32
    return %arg0, %arg1 : i32, i32
  }
}

module attributes {stable_mosaic.version = 11 : i64} {
  func.func @_ln_linear_kernel(%arg0: i32, %arg1: i32, %arg2: memref<16x32xbf16, #tpu.memory_space<vmem>>, %arg3: memref<1x32xf32, #tpu.memory_space<vmem>>, %arg4: memref<1x32xf32, #tpu.memory_space<vmem>>, %arg5: memref<32x128xbf16, #tpu.memory_space<vmem>>, %arg6: memref<1x128xf32, #tpu.memory_space<vmem>>, %arg7: memref<16x128xbf16, #tpu.memory_space<vmem>>, %arg8: memref<16x32xbf16, #tpu.memory_space<vmem>>) attributes {dimension_semantics = [#tpu.dimension_semantics<parallel>, #tpu.dimension_semantics<arbitrary>], iteration_bounds = array<i64: 1, 1>, scalar_prefetch = 0 : i64, scratch_operands = 1 : i64, tpu.core_type = #tpu.core_type<tc>, window_params = [{transform_indices = @transform_0, window_bounds = array<i64: 16, 32>}, {pipeline_mode = #tpu.pipeline_mode<synchronous>, transform_indices = @transform_1, window_bounds = array<i64: 1, 32>}, {pipeline_mode = #tpu.pipeline_mode<synchronous>, transform_indices = @transform_2, window_bounds = array<i64: 1, 32>}, {transform_indices = @transform_3, window_bounds = array<i64: 32, 128>}, {transform_indices = @transform_4, window_bounds = array<i64: 1, 128>}, {transform_indices = @transform_5, window_bounds = array<i64: 16, 128>}]} {
    %c0_i32 = arith.constant 0 : i32
    %0 = arith.cmpi eq, %arg1, %c0_i32 : i32
    %1 = arith.extui %0 : i1 to i32
    %c0_i32_0 = arith.constant 0 : i32
    %2 = arith.cmpi ne, %1, %c0_i32_0 : i32
    scf.if %2 {
      %c0_12 = arith.constant 0 : index
      %c0_13 = arith.constant 0 : index
      %24 = vector.load %arg2[%c0_12, %c0_13] : memref<16x32xbf16, #tpu.memory_space<vmem>>, vector<16x32xbf16>
      %25 = arith.extf %24 : vector<16x32xbf16> to vector<16x32xf32>
      %cst_14 = arith.constant dense<0.000000e+00> : vector<16xf32>
      %26 = vector.multi_reduction <add>, %25, %cst_14 [1] : vector<16x32xf32> to vector<16xf32>
      %27 = vector.shape_cast %26 : vector<16xf32> to vector<16x1xf32>
      %cst_15 = arith.constant 3.200000e+01 : f32
      %28 = vector.broadcast %cst_15 : f32 to vector<16x1xf32>
      %29 = arith.divf %27, %28 : vector<16x1xf32>
      %30 = vector.broadcast %29 : vector<16x1xf32> to vector<16x32xf32>
      %31 = arith.subf %25, %30 : vector<16x32xf32>
      %32 = arith.mulf %31, %31 : vector<16x32xf32>
      %cst_16 = arith.constant dense<0.000000e+00> : vector<16xf32>
      %33 = vector.multi_reduction <add>, %32, %cst_16 [1] : vector<16x32xf32> to vector<16xf32>
      %34 = vector.shape_cast %33 : vector<16xf32> to vector<16x1xf32>
      %cst_17 = arith.constant 3.200000e+01 : f32
      %35 = vector.broadcast %cst_17 : f32 to vector<16x1xf32>
      %36 = arith.divf %34, %35 : vector<16x1xf32>
      %37 = vector.broadcast %29 : vector<16x1xf32> to vector<16x32xf32>
      %38 = arith.subf %25, %37 : vector<16x32xf32>
      %cst_18 = arith.constant 9.99999974E-6 : f32
      %39 = vector.broadcast %cst_18 : f32 to vector<16x1xf32>
      %40 = arith.addf %36, %39 : vector<16x1xf32>
      %41 = math.rsqrt %40 : vector<16x1xf32>
      %42 = vector.broadcast %41 : vector<16x1xf32> to vector<16x32xf32>
      %43 = arith.mulf %38, %42 : vector<16x32xf32>
      %c0_19 = arith.constant 0 : index
      %c0_20 = arith.constant 0 : index
      %44 = vector.load %arg3[%c0_19, %c0_20] : memref<1x32xf32, #tpu.memory_space<vmem>>, vector<1x32xf32>
      %45 = vector.broadcast %44 : vector<1x32xf32> to vector<16x32xf32>
      %46 = arith.mulf %43, %45 : vector<16x32xf32>
      %c0_21 = arith.constant 0 : index
      %c0_22 = arith.constant 0 : index
      %47 = vector.load %arg4[%c0_21, %c0_22] : memref<1x32xf32, #tpu.memory_space<vmem>>, vector<1x32xf32>
      %48 = vector.broadcast %47 : vector<1x32xf32> to vector<16x32xf32>
      %49 = arith.addf %46, %48 : vector<16x32xf32>
      %50 = arith.truncf %49 : vector<16x32xf32> to vector<16x32xbf16>
      %c0_23 = arith.constant 0 : index
      %c0_24 = arith.constant 0 : index
      %51 = vector.load %arg8[%c0_23, %c0_24] : memref<16x32xbf16, #tpu.memory_space<vmem>>, vector<16x32xbf16>
      tpu.vector_store %arg8[%c0_23, %c0_24], %50 {strides = array<i32>} : memref<16x32xbf16, #tpu.memory_space<vmem>>, vector<16x32xbf16>,
    } else {
    }
    %c0 = arith.constant 0 : index
    %c0_1 = arith.constant 0 : index
    %3 = vector.load %arg8[%c0, %c0_1] : memref<16x32xbf16, #tpu.memory_space<vmem>>, vector<16x32xbf16>
    %c0_2 = arith.constant 0 : index
    %c0_3 = arith.constant 0 : index
    %4 = vector.load %arg5[%c0_2, %c0_3] : memref<32x128xbf16, #tpu.memory_space<vmem>>, vector<32x128xbf16>
    %cst = arith.constant dense<0.000000e+00> : vector<16x128xf32>
    %5 = tpu.matmul %3, %4, %cst {dimension_numbers = #tpu.dot_dimension_numbers<[1], [0], [0], [1], [0, 0, 1, 1], [], []>} : vector<16x32xbf16>, vector<32x128xbf16>, vector<16x128xf32> -> vector<16x128xf32>
    %c0_4 = arith.constant 0 : index
    %c0_5 = arith.constant 0 : index
    %6 = vector.load %arg6[%c0_4, %c0_5] : memref<1x128xf32, #tpu.memory_space<vmem>>, vector<1x128xf32>
    %7 = vector.broadcast %6 : vector<1x128xf32> to vector<16x128xf32>
    %8 = arith.addf %5, %7 : vector<16x128xf32>
    %cst_6 = arith.constant 5.000000e-01 : f32
    %9 = vector.broadcast %cst_6 : f32 to vector<16x128xf32>
    %10 = arith.mulf %9, %8 : vector<16x128xf32>
    %cst_7 = arith.constant 4.471500e-02 : f32
    %11 = vector.broadcast %cst_7 : f32 to vector<16x128xf32>
    %12 = arith.mulf %11, %8 : vector<16x128xf32>
    %13 = arith.mulf %12, %8 : vector<16x128xf32>
    %14 = arith.mulf %13, %8 : vector<16x128xf32>
    %15 = arith.addf %8, %14 : vector<16x128xf32>
    %cst_8 = arith.constant 0.797884583 : f32
    %16 = vector.broadcast %cst_8 : f32 to vector<16x128xf32>
    %17 = arith.mulf %16, %15 : vector<16x128xf32>
    %18 = math.tanh %17 : vector<16x128xf32>
    %cst_9 = arith.constant 1.000000e+00 : f32
    %19 = vector.broadcast %cst_9 : f32 to vector<16x128xf32>
    %20 = arith.addf %19, %18 : vector<16x128xf32>
    %21 = arith.mulf %10, %20 : vector<16x128xf32>
    %22 = arith.truncf %21 : vector<16x128xf32> to vector<16x128xbf16>
    %c0_10 = arith.constant 0 : index
    %c0_11 = arith.constant 0 : index
    %23 = vector.load %arg7[%c0_10, %c0_11] : memref<16x128xbf16, #tpu.memory_space<vmem>>, vector<16x128xbf16>
    tpu.vector_store %arg7[%c0_10, %c0_11], %22 {strides = array<i32>} : memref<16x128xbf16, #tpu.memory_space<vmem>>, vector<16x128xbf16>,
    return
  }
  func.func @transform_0(%arg0: i32, %arg1: i32) -> (i32, i32) {
    %c0_i32 = arith.constant 0 : i32
    %c0_i32_0 = arith.constant 0 : i32
    return %arg0, %c0_i32 : i32, i32
  }
  func.func @transform_1(%arg0: i32, %arg1: i32) -> (i32, i32) {
    %c0_i32 = arith.constant 0 : i32
    %c0_i32_0 = arith.constant 0 : i32
    %c0_i32_1 = arith.constant 0 : i32
    return %c0_i32, %c0_i32_0 : i32, i32
  }
  func.func @transform_2(%arg0: i32, %arg1: i32) -> (i32, i32) {
    %c0_i32 = arith.constant 0 : i32
    %c0_i32_0 = arith.constant 0 : i32
    %c0_i32_1 = arith.constant 0 : i32
    return %c0_i32, %c0_i32_0 : i32, i32
  }
  func.func @transform_3(%arg0: i32, %arg1: i32) -> (i32, i32) {
    %c0_i32 = arith.constant 0 : i32
    %c0_i32_0 = arith.constant 0 : i32
    return %c0_i32, %arg1 : i32, i32
  }
  func.func @transform_4(%arg0: i32, %arg1: i32) -> (i32, i32) {
    %c0_i32 = arith.constant 0 : i32
    %c0_i32_0 = arith.constant 0 : i32
    return %c0_i32, %arg1 : i32, i32
  }
  func.func @transform_5(%arg0: i32, %arg1: i32) -> (i32, i32) {
    %c0_i32 = arith.constant 0 : i32
    return %arg0, %arg1 : i32, i32
  }
}

module attributes {stable_mosaic.version = 11 : i64} {
  func.func @_linear_res_kernel(%arg0: i32, %arg1: i32, %arg2: i32, %arg3: memref<16x32xbf16, #tpu.memory_space<vmem>>, %arg4: memref<32x32xbf16, #tpu.memory_space<vmem>>, %arg5: memref<1x32xf32, #tpu.memory_space<vmem>>, %arg6: memref<16x32xbf16, #tpu.memory_space<vmem>>, %arg7: memref<16x32xbf16, #tpu.memory_space<vmem>>, %arg8: memref<16x32xf32, #tpu.memory_space<vmem>>) attributes {dimension_semantics = [#tpu.dimension_semantics<parallel>, #tpu.dimension_semantics<parallel>, #tpu.dimension_semantics<arbitrary>], iteration_bounds = array<i64: 1, 1, 1>, scalar_prefetch = 0 : i64, scratch_operands = 1 : i64, tpu.core_type = #tpu.core_type<tc>, window_params = [{transform_indices = @transform_0, window_bounds = array<i64: 16, 32>}, {transform_indices = @transform_1, window_bounds = array<i64: 32, 32>}, {transform_indices = @transform_2, window_bounds = array<i64: 1, 32>}, {transform_indices = @transform_3, window_bounds = array<i64: 16, 32>}, {transform_indices = @transform_4, window_bounds = array<i64: 16, 32>}]} {
    %c0_i32 = arith.constant 0 : i32
    %0 = arith.cmpi eq, %arg2, %c0_i32 : i32
    %1 = arith.extui %0 : i1 to i32
    %c0_i32_0 = arith.constant 0 : i32
    %2 = arith.cmpi ne, %1, %c0_i32_0 : i32
    scf.if %2 {
      %cst_10 = arith.constant 0.000000e+00 : f32
      %12 = vector.broadcast %cst_10 : f32 to vector<16x32xf32>
      %c0_11 = arith.constant 0 : index
      %c0_12 = arith.constant 0 : index
      %13 = vector.load %arg8[%c0_11, %c0_12] : memref<16x32xf32, #tpu.memory_space<vmem>>, vector<16x32xf32>
      tpu.vector_store %arg8[%c0_11, %c0_12], %12 {strides = array<i32>} : memref<16x32xf32, #tpu.memory_space<vmem>>, vector<16x32xf32>,
    } else {
    }
    %c0 = arith.constant 0 : index
    %c0_1 = arith.constant 0 : index
    %3 = vector.load %arg8[%c0, %c0_1] : memref<16x32xf32, #tpu.memory_space<vmem>>, vector<16x32xf32>
    %c0_2 = arith.constant 0 : index
    %c0_3 = arith.constant 0 : index
    %4 = vector.load %arg3[%c0_2, %c0_3] : memref<16x32xbf16, #tpu.memory_space<vmem>>, vector<16x32xbf16>
    %c0_4 = arith.constant 0 : index
    %c0_5 = arith.constant 0 : index
    %5 = vector.load %arg4[%c0_4, %c0_5] : memref<32x32xbf16, #tpu.memory_space<vmem>>, vector<32x32xbf16>
    %cst = arith.constant dense<0.000000e+00> : vector<16x32xf32>
    %6 = tpu.matmul %4, %5, %cst {dimension_numbers = #tpu.dot_dimension_numbers<[1], [0], [0], [1], [0, 0, 1, 1], [], []>} : vector<16x32xbf16>, vector<32x32xbf16>, vector<16x32xf32> -> vector<16x32xf32>
    %7 = arith.addf %3, %6 : vector<16x32xf32>
    %c0_6 = arith.constant 0 : index
    %c0_7 = arith.constant 0 : index
    %8 = vector.load %arg8[%c0_6, %c0_7] : memref<16x32xf32, #tpu.memory_space<vmem>>, vector<16x32xf32>
    tpu.vector_store %arg8[%c0_6, %c0_7], %7 {strides = array<i32>} : memref<16x32xf32, #tpu.memory_space<vmem>>, vector<16x32xf32>,
    %c0_i32_8 = arith.constant 0 : i32
    %9 = arith.cmpi eq, %arg2, %c0_i32_8 : i32
    %10 = arith.extui %9 : i1 to i32
    %c0_i32_9 = arith.constant 0 : i32
    %11 = arith.cmpi ne, %10, %c0_i32_9 : i32
    scf.if %11 {
      %c0_10 = arith.constant 0 : index
      %c0_11 = arith.constant 0 : index
      %12 = vector.load %arg8[%c0_10, %c0_11] : memref<16x32xf32, #tpu.memory_space<vmem>>, vector<16x32xf32>
      %c0_12 = arith.constant 0 : index
      %c0_13 = arith.constant 0 : index
      %13 = vector.load %arg5[%c0_12, %c0_13] : memref<1x32xf32, #tpu.memory_space<vmem>>, vector<1x32xf32>
      %14 = vector.broadcast %13 : vector<1x32xf32> to vector<16x32xf32>
      %15 = arith.addf %12, %14 : vector<16x32xf32>
      %c0_14 = arith.constant 0 : index
      %c0_15 = arith.constant 0 : index
      %16 = vector.load %arg6[%c0_14, %c0_15] : memref<16x32xbf16, #tpu.memory_space<vmem>>, vector<16x32xbf16>
      %17 = arith.extf %16 : vector<16x32xbf16> to vector<16x32xf32>
      %18 = arith.addf %15, %17 : vector<16x32xf32>
      %19 = arith.truncf %18 : vector<16x32xf32> to vector<16x32xbf16>
      %c0_16 = arith.constant 0 : index
      %c0_17 = arith.constant 0 : index
      %20 = vector.load %arg7[%c0_16, %c0_17] : memref<16x32xbf16, #tpu.memory_space<vmem>>, vector<16x32xbf16>
      tpu.vector_store %arg7[%c0_16, %c0_17], %19 {strides = array<i32>} : memref<16x32xbf16, #tpu.memory_space<vmem>>, vector<16x32xbf16>,
    } else {
    }
    return
  }
  func.func @transform_0(%arg0: i32, %arg1: i32, %arg2: i32) -> (i32, i32) {
    %c0_i32 = arith.constant 0 : i32
    return %arg0, %arg2 : i32, i32
  }
  func.func @transform_1(%arg0: i32, %arg1: i32, %arg2: i32) -> (i32, i32) {
    %c0_i32 = arith.constant 0 : i32
    return %arg2, %arg1 : i32, i32
  }
  func.func @transform_2(%arg0: i32, %arg1: i32, %arg2: i32) -> (i32, i32) {
    %c0_i32 = arith.constant 0 : i32
    %c0_i32_0 = arith.constant 0 : i32
    return %c0_i32, %arg1 : i32, i32
  }
  func.func @transform_3(%arg0: i32, %arg1: i32, %arg2: i32) -> (i32, i32) {
    %c0_i32 = arith.constant 0 : i32
    return %arg0, %arg1 : i32, i32
  }
  func.func @transform_4(%arg0: i32, %arg1: i32, %arg2: i32) -> (i32, i32) {
    %c0_i32 = arith.constant 0 : i32
    return %arg0, %arg1 : i32, i32
  }
}

module attributes {stable_mosaic.version = 11 : i64} {
  func.func @_flash_attn_kernel(%arg0: i32, %arg1: i32, %arg2: i32, %arg3: i32, %arg4: memref<1x8x96xbf16, #tpu.memory_space<vmem>>, %arg5: memref<1x8x96xbf16, #tpu.memory_space<vmem>>, %arg6: memref<1x8x32xbf16, #tpu.memory_space<vmem>>, %arg7: memref<4x8x1xf32, #tpu.memory_space<vmem>>, %arg8: memref<4x8x1xf32, #tpu.memory_space<vmem>>, %arg9: memref<4x8x8xf32, #tpu.memory_space<vmem>>) attributes {dimension_semantics = [#tpu.dimension_semantics<parallel>, #tpu.dimension_semantics<parallel>, #tpu.dimension_semantics<parallel>, #tpu.dimension_semantics<arbitrary>], iteration_bounds = array<i64: 2, 1, 1, 1>, scalar_prefetch = 0 : i64, scratch_operands = 3 : i64, tpu.core_type = #tpu.core_type<tc>, window_params = [{transform_indices = @transform_0, window_bounds = array<i64: 1, 8, 96>}, {transform_indices = @transform_1, window_bounds = array<i64: 1, 8, 96>}, {transform_indices = @transform_2, window_bounds = array<i64: 1, 8, 32>}]} {
    %c8_i32 = arith.constant 8 : i32
    %0 = arith.muli %arg2, %c8_i32 : i32
    %c8_i32_0 = arith.constant 8 : i32
    %1 = arith.muli %arg3, %c8_i32_0 : i32
    %c0_i32 = arith.constant 0 : i32
    %2 = arith.cmpi eq, %arg3, %c0_i32 : i32
    %3 = arith.extui %2 : i1 to i32
    %c0_i32_1 = arith.constant 0 : i32
    %4 = arith.cmpi ne, %3, %c0_i32_1 : i32
    scf.if %4 {
      %cst = arith.constant 0xFF800000 : f32
      %14 = vector.broadcast %cst : f32 to vector<4x8x1xf32>
      %c0 = arith.constant 0 : index
      %c0_6 = arith.constant 0 : index
      %c0_7 = arith.constant 0 : index
      %15 = vector.load %arg7[%c0, %c0_6, %c0_7] : memref<4x8x1xf32, #tpu.memory_space<vmem>>, vector<4x8x1xf32>
      tpu.vector_store %arg7[%c0, %c0_6, %c0_7], %14 {strides = array<i32>} : memref<4x8x1xf32, #tpu.memory_space<vmem>>, vector<4x8x1xf32>,
      %cst_8 = arith.constant 0.000000e+00 : f32
      %16 = vector.broadcast %cst_8 : f32 to vector<4x8x1xf32>
      %c0_9 = arith.constant 0 : index
      %c0_10 = arith.constant 0 : index
      %c0_11 = arith.constant 0 : index
      %17 = vector.load %arg8[%c0_9, %c0_10, %c0_11] : memref<4x8x1xf32, #tpu.memory_space<vmem>>, vector<4x8x1xf32>
      tpu.vector_store %arg8[%c0_9, %c0_10, %c0_11], %16 {strides = array<i32>} : memref<4x8x1xf32, #tpu.memory_space<vmem>>, vector<4x8x1xf32>,
      %cst_12 = arith.constant 0.000000e+00 : f32
      %18 = vector.broadcast %cst_12 : f32 to vector<4x8x8xf32>
      %c0_13 = arith.constant 0 : index
      %c0_14 = arith.constant 0 : index
      %c0_15 = arith.constant 0 : index
      %19 = vector.load %arg9[%c0_13, %c0_14, %c0_15] : memref<4x8x8xf32, #tpu.memory_space<vmem>>, vector<4x8x8xf32>
      tpu.vector_store %arg9[%c0_13, %c0_14, %c0_15], %18 {strides = array<i32>} : memref<4x8x8xf32, #tpu.memory_space<vmem>>, vector<4x8x8xf32>,
    } else {
    }
    %5 = arith.cmpi eq, %arg3, %arg2 : i32
    %6 = arith.extui %5 : i1 to i32
    %c0_i32_2 = arith.constant 0 : i32
    %7 = arith.cmpi ne, %6, %c0_i32_2 : i32
    scf.if %7 {
      %c0 = arith.constant 0 : index
      %c0_6 = arith.constant 0 : index
      %c0_7 = arith.constant 0 : index
      %14 = vector.load %arg4[%c0, %c0_6, %c0_7] : memref<1x8x96xbf16, #tpu.memory_space<vmem>>, vector<1x8x96xbf16>
      %15 = vector.shape_cast %14 : vector<1x8x96xbf16> to vector<8x96xbf16>
      %16 = vector.extract_strided_slice %15 {offsets = [0, 0], sizes = [8, 32], strides = [1, 1]} : vector<8x96xbf16> to vector<8x32xbf16>
      %c0_8 = arith.constant 0 : index
      %c0_9 = arith.constant 0 : index
      %c0_10 = arith.constant 0 : index
      %17 = vector.load %arg5[%c0_8, %c0_9, %c0_10] : memref<1x8x96xbf16, #tpu.memory_space<vmem>>, vector<1x8x96xbf16>
      %18 = vector.shape_cast %17 : vector<1x8x96xbf16> to vector<8x96xbf16>
      %19 = vector.extract_strided_slice %18 {offsets = [0, 32], sizes = [8, 32], strides = [1, 1]} : vector<8x96xbf16> to vector<8x32xbf16>
      %20 = vector.extract_strided_slice %18 {offsets = [0, 64], sizes = [8, 32], strides = [1, 1]} : vector<8x96xbf16> to vector<8x32xbf16>
      %21 = tpu.iota {dimensions = array<i32: 0>} : vector<8x8xi32>
      %22 = vector.broadcast %0 : i32 to vector<8x8xi32>
      %23 = arith.addi %22, %21 : vector<8x8xi32>
      %24 = tpu.iota {dimensions = array<i32: 1>} : vector<8x8xi32>
      %25 = vector.broadcast %1 : i32 to vector<8x8xi32>
      %26 = arith.addi %25, %24 : vector<8x8xi32>
      %27 = arith.cmpi sle, %26, %23 : vector<8x8xi32>
      %28 = vector.extract_strided_slice %16 {offsets = [0, 0], sizes = [8, 8], strides = [1, 1]} : vector<8x32xbf16> to vector<8x8xbf16>
      %29 = arith.extf %28 : vector<8x8xbf16> to vector<8x8xf32>
      %cst = arith.constant 0.353553385 : f32
      %30 = vector.broadcast %cst : f32 to vector<8x8xf32>
      %31 = arith.mulf %29, %30 : vector<8x8xf32>
      %32 = arith.truncf %31 : vector<8x8xf32> to vector<8x8xbf16>
      %33 = vector.extract_strided_slice %19 {offsets = [0, 0], sizes = [8, 8], strides = [1, 1]} : vector<8x32xbf16> to vector<8x8xbf16>
      %34 = vector.extract_strided_slice %20 {offsets = [0, 0], sizes = [8, 8], strides = [1, 1]} : vector<8x32xbf16> to vector<8x8xbf16>
      %cst_11 = arith.constant dense<0.000000e+00> : vector<8x8xf32>
      %35 = tpu.matmul %32, %33, %cst_11 {dimension_numbers = #tpu.dot_dimension_numbers<[1], [1], [0], [0], [0, 0, 1, 0], [], []>} : vector<8x8xbf16>, vector<8x8xbf16>, vector<8x8xf32> -> vector<8x8xf32>
      %cst_12 = arith.constant 0xFF800000 : f32
      %36 = vector.broadcast %cst_12 : f32 to vector<8x8xf32>
      %37 = arith.select %27, %35, %36 : vector<8x8xi1>, vector<8x8xf32>
      %c0_13 = arith.constant 0 : index
      %c0_14 = arith.constant 0 : index
      %c0_15 = arith.constant 0 : index
      %38 = vector.load %arg7[%c0_13, %c0_14, %c0_15] : memref<4x8x1xf32, #tpu.memory_space<vmem>>, vector<1x8x1xf32>
      %39 = vector.shape_cast %38 : vector<1x8x1xf32> to vector<8x1xf32>
      %cst_16 = arith.constant dense<0xFF800000> : vector<8xf32>
      %40 = vector.multi_reduction <maximumf>, %37, %cst_16 [1] : vector<8x8xf32> to vector<8xf32>
      %41 = vector.shape_cast %40 : vector<8xf32> to vector<8x1xf32>
      %42 = arith.maximumf %39, %41 : vector<8x1xf32>
      %43 = arith.subf %39, %42 : vector<8x1xf32>
      %44 = math.exp %43 : vector<8x1xf32>
      %45 = vector.broadcast %42 : vector<8x1xf32> to vector<8x8xf32>
      %46 = arith.subf %37, %45 : vector<8x8xf32>
      %47 = math.exp %46 : vector<8x8xf32>
      %c0_17 = arith.constant 0 : index
      %c0_18 = arith.constant 0 : index
      %c0_19 = arith.constant 0 : index
      %48 = vector.load %arg8[%c0_17, %c0_18, %c0_19] : memref<4x8x1xf32, #tpu.memory_space<vmem>>, vector<1x8x1xf32>
      %49 = vector.shape_cast %48 : vector<1x8x1xf32> to vector<8x1xf32>
      %50 = arith.mulf %44, %49 : vector<8x1xf32>
      %cst_20 = arith.constant dense<0.000000e+00> : vector<8xf32>
      %51 = vector.multi_reduction <add>, %47, %cst_20 [1] : vector<8x8xf32> to vector<8xf32>
      %52 = vector.shape_cast %51 : vector<8xf32> to vector<8x1xf32>
      %53 = arith.addf %50, %52 : vector<8x1xf32>
      %c0_21 = arith.constant 0 : index
      %c0_22 = arith.constant 0 : index
      %c0_23 = arith.constant 0 : index
      %54 = vector.load %arg8[%c0_21, %c0_22, %c0_23] : memref<4x8x1xf32, #tpu.memory_space<vmem>>, vector<1x8x1xf32>
      %55 = vector.shape_cast %54 : vector<1x8x1xf32> to vector<8x1xf32>
      %56 = vector.shape_cast %53 : vector<8x1xf32> to vector<1x8x1xf32>
      tpu.vector_store %arg8[%c0_21, %c0_22, %c0_23], %56 {strides = array<i32>} : memref<4x8x1xf32, #tpu.memory_space<vmem>>, vector<1x8x1xf32>,
      %c0_24 = arith.constant 0 : index
      %c0_25 = arith.constant 0 : index
      %c0_26 = arith.constant 0 : index
      %57 = vector.load %arg9[%c0_24, %c0_25, %c0_26] : memref<4x8x8xf32, #tpu.memory_space<vmem>>, vector<1x8x8xf32>
      %58 = vector.shape_cast %57 : vector<1x8x8xf32> to vector<8x8xf32>
      %59 = vector.broadcast %44 : vector<8x1xf32> to vector<8x8xf32>
      %60 = arith.mulf %59, %58 : vector<8x8xf32>
      %61 = arith.truncf %47 : vector<8x8xf32> to vector<8x8xbf16>
      %cst_27 = arith.constant dense<0.000000e+00> : vector<8x8xf32>
      %62 = tpu.matmul %61, %34, %cst_27 {dimension_numbers = #tpu.dot_dimension_numbers<[1], [0], [0], [1], [0, 0, 1, 1], [], []>} : vector<8x8xbf16>, vector<8x8xbf16>, vector<8x8xf32> -> vector<8x8xf32>
      %63 = arith.addf %60, %62 : vector<8x8xf32>
      %c0_28 = arith.constant 0 : index
      %c0_29 = arith.constant 0 : index
      %c0_30 = arith.constant 0 : index
      %64 = vector.load %arg9[%c0_28, %c0_29, %c0_30] : memref<4x8x8xf32, #tpu.memory_space<vmem>>, vector<1x8x8xf32>
      %65 = vector.shape_cast %64 : vector<1x8x8xf32> to vector<8x8xf32>
      %66 = vector.shape_cast %63 : vector<8x8xf32> to vector<1x8x8xf32>
      tpu.vector_store %arg9[%c0_28, %c0_29, %c0_30], %66 {strides = array<i32>} : memref<4x8x8xf32, #tpu.memory_space<vmem>>, vector<1x8x8xf32>,
      %c0_31 = arith.constant 0 : index
      %c0_32 = arith.constant 0 : index
      %c0_33 = arith.constant 0 : index
      %67 = vector.load %arg7[%c0_31, %c0_32, %c0_33] : memref<4x8x1xf32, #tpu.memory_space<vmem>>, vector<1x8x1xf32>
      %68 = vector.shape_cast %67 : vector<1x8x1xf32> to vector<8x1xf32>
      %69 = vector.shape_cast %42 : vector<8x1xf32> to vector<1x8x1xf32>
      tpu.vector_store %arg7[%c0_31, %c0_32, %c0_33], %69 {strides = array<i32>} : memref<4x8x1xf32, #tpu.memory_space<vmem>>, vector<1x8x1xf32>,
      %70 = vector.extract_strided_slice %16 {offsets = [0, 8], sizes = [8, 8], strides = [1, 1]} : vector<8x32xbf16> to vector<8x8xbf16>
      %71 = arith.extf %70 : vector<8x8xbf16> to vector<8x8xf32>
      %cst_34 = arith.constant 0.353553385 : f32
      %72 = vector.broadcast %cst_34 : f32 to vector<8x8xf32>
      %73 = arith.mulf %71, %72 : vector<8x8xf32>
      %74 = arith.truncf %73 : vector<8x8xf32> to vector<8x8xbf16>
      %75 = vector.extract_strided_slice %19 {offsets = [0, 8], sizes = [8, 8], strides = [1, 1]} : vector<8x32xbf16> to vector<8x8xbf16>
      %76 = vector.extract_strided_slice %20 {offsets = [0, 8], sizes = [8, 8], strides = [1, 1]} : vector<8x32xbf16> to vector<8x8xbf16>
      %cst_35 = arith.constant dense<0.000000e+00> : vector<8x8xf32>
      %77 = tpu.matmul %74, %75, %cst_35 {dimension_numbers = #tpu.dot_dimension_numbers<[1], [1], [0], [0], [0, 0, 1, 0], [], []>} : vector<8x8xbf16>, vector<8x8xbf16>, vector<8x8xf32> -> vector<8x8xf32>
      %cst_36 = arith.constant 0xFF800000 : f32
      %78 = vector.broadcast %cst_36 : f32 to vector<8x8xf32>
      %79 = arith.select %27, %77, %78 : vector<8x8xi1>, vector<8x8xf32>
      %c1 = arith.constant 1 : index
      %c0_37 = arith.constant 0 : index
      %c0_38 = arith.constant 0 : index
      %80 = vector.load %arg7[%c1, %c0_37, %c0_38] : memref<4x8x1xf32, #tpu.memory_space<vmem>>, vector<1x8x1xf32>
      %81 = vector.shape_cast %80 : vector<1x8x1xf32> to vector<8x1xf32>
      %cst_39 = arith.constant dense<0xFF800000> : vector<8xf32>
      %82 = vector.multi_reduction <maximumf>, %79, %cst_39 [1] : vector<8x8xf32> to vector<8xf32>
      %83 = vector.shape_cast %82 : vector<8xf32> to vector<8x1xf32>
      %84 = arith.maximumf %81, %83 : vector<8x1xf32>
      %85 = arith.subf %81, %84 : vector<8x1xf32>
      %86 = math.exp %85 : vector<8x1xf32>
      %87 = vector.broadcast %84 : vector<8x1xf32> to vector<8x8xf32>
      %88 = arith.subf %79, %87 : vector<8x8xf32>
      %89 = math.exp %88 : vector<8x8xf32>
      %c1_40 = arith.constant 1 : index
      %c0_41 = arith.constant 0 : index
      %c0_42 = arith.constant 0 : index
      %90 = vector.load %arg8[%c1_40, %c0_41, %c0_42] : memref<4x8x1xf32, #tpu.memory_space<vmem>>, vector<1x8x1xf32>
      %91 = vector.shape_cast %90 : vector<1x8x1xf32> to vector<8x1xf32>
      %92 = arith.mulf %86, %91 : vector<8x1xf32>
      %cst_43 = arith.constant dense<0.000000e+00> : vector<8xf32>
      %93 = vector.multi_reduction <add>, %89, %cst_43 [1] : vector<8x8xf32> to vector<8xf32>
      %94 = vector.shape_cast %93 : vector<8xf32> to vector<8x1xf32>
      %95 = arith.addf %92, %94 : vector<8x1xf32>
      %c1_44 = arith.constant 1 : index
      %c0_45 = arith.constant 0 : index
      %c0_46 = arith.constant 0 : index
      %96 = vector.load %arg8[%c1_44, %c0_45, %c0_46] : memref<4x8x1xf32, #tpu.memory_space<vmem>>, vector<1x8x1xf32>
      %97 = vector.shape_cast %96 : vector<1x8x1xf32> to vector<8x1xf32>
      %98 = vector.shape_cast %95 : vector<8x1xf32> to vector<1x8x1xf32>
      tpu.vector_store %arg8[%c1_44, %c0_45, %c0_46], %98 {strides = array<i32>} : memref<4x8x1xf32, #tpu.memory_space<vmem>>, vector<1x8x1xf32>,
      %c1_47 = arith.constant 1 : index
      %c0_48 = arith.constant 0 : index
      %c0_49 = arith.constant 0 : index
      %99 = vector.load %arg9[%c1_47, %c0_48, %c0_49] : memref<4x8x8xf32, #tpu.memory_space<vmem>>, vector<1x8x8xf32>
      %100 = vector.shape_cast %99 : vector<1x8x8xf32> to vector<8x8xf32>
      %101 = vector.broadcast %86 : vector<8x1xf32> to vector<8x8xf32>
      %102 = arith.mulf %101, %100 : vector<8x8xf32>
      %103 = arith.truncf %89 : vector<8x8xf32> to vector<8x8xbf16>
      %cst_50 = arith.constant dense<0.000000e+00> : vector<8x8xf32>
      %104 = tpu.matmul %103, %76, %cst_50 {dimension_numbers = #tpu.dot_dimension_numbers<[1], [0], [0], [1], [0, 0, 1, 1], [], []>} : vector<8x8xbf16>, vector<8x8xbf16>, vector<8x8xf32> -> vector<8x8xf32>
      %105 = arith.addf %102, %104 : vector<8x8xf32>
      %c1_51 = arith.constant 1 : index
      %c0_52 = arith.constant 0 : index
      %c0_53 = arith.constant 0 : index
      %106 = vector.load %arg9[%c1_51, %c0_52, %c0_53] : memref<4x8x8xf32, #tpu.memory_space<vmem>>, vector<1x8x8xf32>
      %107 = vector.shape_cast %106 : vector<1x8x8xf32> to vector<8x8xf32>
      %108 = vector.shape_cast %105 : vector<8x8xf32> to vector<1x8x8xf32>
      tpu.vector_store %arg9[%c1_51, %c0_52, %c0_53], %108 {strides = array<i32>} : memref<4x8x8xf32, #tpu.memory_space<vmem>>, vector<1x8x8xf32>,
      %c1_54 = arith.constant 1 : index
      %c0_55 = arith.constant 0 : index
      %c0_56 = arith.constant 0 : index
      %109 = vector.load %arg7[%c1_54, %c0_55, %c0_56] : memref<4x8x1xf32, #tpu.memory_space<vmem>>, vector<1x8x1xf32>
      %110 = vector.shape_cast %109 : vector<1x8x1xf32> to vector<8x1xf32>
      %111 = vector.shape_cast %84 : vector<8x1xf32> to vector<1x8x1xf32>
      tpu.vector_store %arg7[%c1_54, %c0_55, %c0_56], %111 {strides = array<i32>} : memref<4x8x1xf32, #tpu.memory_space<vmem>>, vector<1x8x1xf32>,
      %112 = vector.extract_strided_slice %16 {offsets = [0, 16], sizes = [8, 8], strides = [1, 1]} : vector<8x32xbf16> to vector<8x8xbf16>
      %113 = arith.extf %112 : vector<8x8xbf16> to vector<8x8xf32>
      %cst_57 = arith.constant 0.353553385 : f32
      %114 = vector.broadcast %cst_57 : f32 to vector<8x8xf32>
      %115 = arith.mulf %113, %114 : vector<8x8xf32>
      %116 = arith.truncf %115 : vector<8x8xf32> to vector<8x8xbf16>
      %117 = vector.extract_strided_slice %19 {offsets = [0, 16], sizes = [8, 8], strides = [1, 1]} : vector<8x32xbf16> to vector<8x8xbf16>
      %118 = vector.extract_strided_slice %20 {offsets = [0, 16], sizes = [8, 8], strides = [1, 1]} : vector<8x32xbf16> to vector<8x8xbf16>
      %cst_58 = arith.constant dense<0.000000e+00> : vector<8x8xf32>
      %119 = tpu.matmul %116, %117, %cst_58 {dimension_numbers = #tpu.dot_dimension_numbers<[1], [1], [0], [0], [0, 0, 1, 0], [], []>} : vector<8x8xbf16>, vector<8x8xbf16>, vector<8x8xf32> -> vector<8x8xf32>
      %cst_59 = arith.constant 0xFF800000 : f32
      %120 = vector.broadcast %cst_59 : f32 to vector<8x8xf32>
      %121 = arith.select %27, %119, %120 : vector<8x8xi1>, vector<8x8xf32>
      %c2 = arith.constant 2 : index
      %c0_60 = arith.constant 0 : index
      %c0_61 = arith.constant 0 : index
      %122 = vector.load %arg7[%c2, %c0_60, %c0_61] : memref<4x8x1xf32, #tpu.memory_space<vmem>>, vector<1x8x1xf32>
      %123 = vector.shape_cast %122 : vector<1x8x1xf32> to vector<8x1xf32>
      %cst_62 = arith.constant dense<0xFF800000> : vector<8xf32>
      %124 = vector.multi_reduction <maximumf>, %121, %cst_62 [1] : vector<8x8xf32> to vector<8xf32>
      %125 = vector.shape_cast %124 : vector<8xf32> to vector<8x1xf32>
      %126 = arith.maximumf %123, %125 : vector<8x1xf32>
      %127 = arith.subf %123, %126 : vector<8x1xf32>
      %128 = math.exp %127 : vector<8x1xf32>
      %129 = vector.broadcast %126 : vector<8x1xf32> to vector<8x8xf32>
      %130 = arith.subf %121, %129 : vector<8x8xf32>
      %131 = math.exp %130 : vector<8x8xf32>
      %c2_63 = arith.constant 2 : index
      %c0_64 = arith.constant 0 : index
      %c0_65 = arith.constant 0 : index
      %132 = vector.load %arg8[%c2_63, %c0_64, %c0_65] : memref<4x8x1xf32, #tpu.memory_space<vmem>>, vector<1x8x1xf32>
      %133 = vector.shape_cast %132 : vector<1x8x1xf32> to vector<8x1xf32>
      %134 = arith.mulf %128, %133 : vector<8x1xf32>
      %cst_66 = arith.constant dense<0.000000e+00> : vector<8xf32>
      %135 = vector.multi_reduction <add>, %131, %cst_66 [1] : vector<8x8xf32> to vector<8xf32>
      %136 = vector.shape_cast %135 : vector<8xf32> to vector<8x1xf32>
      %137 = arith.addf %134, %136 : vector<8x1xf32>
      %c2_67 = arith.constant 2 : index
      %c0_68 = arith.constant 0 : index
      %c0_69 = arith.constant 0 : index
      %138 = vector.load %arg8[%c2_67, %c0_68, %c0_69] : memref<4x8x1xf32, #tpu.memory_space<vmem>>, vector<1x8x1xf32>
      %139 = vector.shape_cast %138 : vector<1x8x1xf32> to vector<8x1xf32>
      %140 = vector.shape_cast %137 : vector<8x1xf32> to vector<1x8x1xf32>
      tpu.vector_store %arg8[%c2_67, %c0_68, %c0_69], %140 {strides = array<i32>} : memref<4x8x1xf32, #tpu.memory_space<vmem>>, vector<1x8x1xf32>,
      %c2_70 = arith.constant 2 : index
      %c0_71 = arith.constant 0 : index
      %c0_72 = arith.constant 0 : index
      %141 = vector.load %arg9[%c2_70, %c0_71, %c0_72] : memref<4x8x8xf32, #tpu.memory_space<vmem>>, vector<1x8x8xf32>
      %142 = vector.shape_cast %141 : vector<1x8x8xf32> to vector<8x8xf32>
      %143 = vector.broadcast %128 : vector<8x1xf32> to vector<8x8xf32>
      %144 = arith.mulf %143, %142 : vector<8x8xf32>
      %145 = arith.truncf %131 : vector<8x8xf32> to vector<8x8xbf16>
      %cst_73 = arith.constant dense<0.000000e+00> : vector<8x8xf32>
      %146 = tpu.matmul %145, %118, %cst_73 {dimension_numbers = #tpu.dot_dimension_numbers<[1], [0], [0], [1], [0, 0, 1, 1], [], []>} : vector<8x8xbf16>, vector<8x8xbf16>, vector<8x8xf32> -> vector<8x8xf32>
      %147 = arith.addf %144, %146 : vector<8x8xf32>
      %c2_74 = arith.constant 2 : index
      %c0_75 = arith.constant 0 : index
      %c0_76 = arith.constant 0 : index
      %148 = vector.load %arg9[%c2_74, %c0_75, %c0_76] : memref<4x8x8xf32, #tpu.memory_space<vmem>>, vector<1x8x8xf32>
      %149 = vector.shape_cast %148 : vector<1x8x8xf32> to vector<8x8xf32>
      %150 = vector.shape_cast %147 : vector<8x8xf32> to vector<1x8x8xf32>
      tpu.vector_store %arg9[%c2_74, %c0_75, %c0_76], %150 {strides = array<i32>} : memref<4x8x8xf32, #tpu.memory_space<vmem>>, vector<1x8x8xf32>,
      %c2_77 = arith.constant 2 : index
      %c0_78 = arith.constant 0 : index
      %c0_79 = arith.constant 0 : index
      %151 = vector.load %arg7[%c2_77, %c0_78, %c0_79] : memref<4x8x1xf32, #tpu.memory_space<vmem>>, vector<1x8x1xf32>
      %152 = vector.shape_cast %151 : vector<1x8x1xf32> to vector<8x1xf32>
      %153 = vector.shape_cast %126 : vector<8x1xf32> to vector<1x8x1xf32>
      tpu.vector_store %arg7[%c2_77, %c0_78, %c0_79], %153 {strides = array<i32>} : memref<4x8x1xf32, #tpu.memory_space<vmem>>, vector<1x8x1xf32>,
      %154 = vector.extract_strided_slice %16 {offsets = [0, 24], sizes = [8, 8], strides = [1, 1]} : vector<8x32xbf16> to vector<8x8xbf16>
      %155 = arith.extf %154 : vector<8x8xbf16> to vector<8x8xf32>
      %cst_80 = arith.constant 0.353553385 : f32
      %156 = vector.broadcast %cst_80 : f32 to vector<8x8xf32>
      %157 = arith.mulf %155, %156 : vector<8x8xf32>
      %158 = arith.truncf %157 : vector<8x8xf32> to vector<8x8xbf16>
      %159 = vector.extract_strided_slice %19 {offsets = [0, 24], sizes = [8, 8], strides = [1, 1]} : vector<8x32xbf16> to vector<8x8xbf16>
      %160 = vector.extract_strided_slice %20 {offsets = [0, 24], sizes = [8, 8], strides = [1, 1]} : vector<8x32xbf16> to vector<8x8xbf16>
      %cst_81 = arith.constant dense<0.000000e+00> : vector<8x8xf32>
      %161 = tpu.matmul %158, %159, %cst_81 {dimension_numbers = #tpu.dot_dimension_numbers<[1], [1], [0], [0], [0, 0, 1, 0], [], []>} : vector<8x8xbf16>, vector<8x8xbf16>, vector<8x8xf32> -> vector<8x8xf32>
      %cst_82 = arith.constant 0xFF800000 : f32
      %162 = vector.broadcast %cst_82 : f32 to vector<8x8xf32>
      %163 = arith.select %27, %161, %162 : vector<8x8xi1>, vector<8x8xf32>
      %c3 = arith.constant 3 : index
      %c0_83 = arith.constant 0 : index
      %c0_84 = arith.constant 0 : index
      %164 = vector.load %arg7[%c3, %c0_83, %c0_84] : memref<4x8x1xf32, #tpu.memory_space<vmem>>, vector<1x8x1xf32>
      %165 = vector.shape_cast %164 : vector<1x8x1xf32> to vector<8x1xf32>
      %cst_85 = arith.constant dense<0xFF800000> : vector<8xf32>
      %166 = vector.multi_reduction <maximumf>, %163, %cst_85 [1] : vector<8x8xf32> to vector<8xf32>
      %167 = vector.shape_cast %166 : vector<8xf32> to vector<8x1xf32>
      %168 = arith.maximumf %165, %167 : vector<8x1xf32>
      %169 = arith.subf %165, %168 : vector<8x1xf32>
      %170 = math.exp %169 : vector<8x1xf32>
      %171 = vector.broadcast %168 : vector<8x1xf32> to vector<8x8xf32>
      %172 = arith.subf %163, %171 : vector<8x8xf32>
      %173 = math.exp %172 : vector<8x8xf32>
      %c3_86 = arith.constant 3 : index
      %c0_87 = arith.constant 0 : index
      %c0_88 = arith.constant 0 : index
      %174 = vector.load %arg8[%c3_86, %c0_87, %c0_88] : memref<4x8x1xf32, #tpu.memory_space<vmem>>, vector<1x8x1xf32>
      %175 = vector.shape_cast %174 : vector<1x8x1xf32> to vector<8x1xf32>
      %176 = arith.mulf %170, %175 : vector<8x1xf32>
      %cst_89 = arith.constant dense<0.000000e+00> : vector<8xf32>
      %177 = vector.multi_reduction <add>, %173, %cst_89 [1] : vector<8x8xf32> to vector<8xf32>
      %178 = vector.shape_cast %177 : vector<8xf32> to vector<8x1xf32>
      %179 = arith.addf %176, %178 : vector<8x1xf32>
      %c3_90 = arith.constant 3 : index
      %c0_91 = arith.constant 0 : index
      %c0_92 = arith.constant 0 : index
      %180 = vector.load %arg8[%c3_90, %c0_91, %c0_92] : memref<4x8x1xf32, #tpu.memory_space<vmem>>, vector<1x8x1xf32>
      %181 = vector.shape_cast %180 : vector<1x8x1xf32> to vector<8x1xf32>
      %182 = vector.shape_cast %179 : vector<8x1xf32> to vector<1x8x1xf32>
      tpu.vector_store %arg8[%c3_90, %c0_91, %c0_92], %182 {strides = array<i32>} : memref<4x8x1xf32, #tpu.memory_space<vmem>>, vector<1x8x1xf32>,
      %c3_93 = arith.constant 3 : index
      %c0_94 = arith.constant 0 : index
      %c0_95 = arith.constant 0 : index
      %183 = vector.load %arg9[%c3_93, %c0_94, %c0_95] : memref<4x8x8xf32, #tpu.memory_space<vmem>>, vector<1x8x8xf32>
      %184 = vector.shape_cast %183 : vector<1x8x8xf32> to vector<8x8xf32>
      %185 = vector.broadcast %170 : vector<8x1xf32> to vector<8x8xf32>
      %186 = arith.mulf %185, %184 : vector<8x8xf32>
      %187 = arith.truncf %173 : vector<8x8xf32> to vector<8x8xbf16>
      %cst_96 = arith.constant dense<0.000000e+00> : vector<8x8xf32>
      %188 = tpu.matmul %187, %160, %cst_96 {dimension_numbers = #tpu.dot_dimension_numbers<[1], [0], [0], [1], [0, 0, 1, 1], [], []>} : vector<8x8xbf16>, vector<8x8xbf16>, vector<8x8xf32> -> vector<8x8xf32>
      %189 = arith.addf %186, %188 : vector<8x8xf32>
      %c3_97 = arith.constant 3 : index
      %c0_98 = arith.constant 0 : index
      %c0_99 = arith.constant 0 : index
      %190 = vector.load %arg9[%c3_97, %c0_98, %c0_99] : memref<4x8x8xf32, #tpu.memory_space<vmem>>, vector<1x8x8xf32>
      %191 = vector.shape_cast %190 : vector<1x8x8xf32> to vector<8x8xf32>
      %192 = vector.shape_cast %189 : vector<8x8xf32> to vector<1x8x8xf32>
      tpu.vector_store %arg9[%c3_97, %c0_98, %c0_99], %192 {strides = array<i32>} : memref<4x8x8xf32, #tpu.memory_space<vmem>>, vector<1x8x8xf32>,
      %c3_100 = arith.constant 3 : index
      %c0_101 = arith.constant 0 : index
      %c0_102 = arith.constant 0 : index
      %193 = vector.load %arg7[%c3_100, %c0_101, %c0_102] : memref<4x8x1xf32, #tpu.memory_space<vmem>>, vector<1x8x1xf32>
      %194 = vector.shape_cast %193 : vector<1x8x1xf32> to vector<8x1xf32>
      %195 = vector.shape_cast %168 : vector<8x1xf32> to vector<1x8x1xf32>
      tpu.vector_store %arg7[%c3_100, %c0_101, %c0_102], %195 {strides = array<i32>} : memref<4x8x1xf32, #tpu.memory_space<vmem>>, vector<1x8x1xf32>,
    } else {
    }
    %8 = arith.cmpi slt, %arg3, %arg2 : i32
    %9 = arith.extui %8 : i1 to i32
    %c0_i32_3 = arith.constant 0 : i32
    %10 = arith.cmpi ne, %9, %c0_i32_3 : i32
    scf.if %10 {
      %c0 = arith.constant 0 : index
      %c0_6 = arith.constant 0 : index
      %c0_7 = arith.constant 0 : index
      %14 = vector.load %arg4[%c0, %c0_6, %c0_7] : memref<1x8x96xbf16, #tpu.memory_space<vmem>>, vector<1x8x96xbf16>
      %15 = vector.shape_cast %14 : vector<1x8x96xbf16> to vector<8x96xbf16>
      %16 = vector.extract_strided_slice %15 {offsets = [0, 0], sizes = [8, 32], strides = [1, 1]} : vector<8x96xbf16> to vector<8x32xbf16>
      %c0_8 = arith.constant 0 : index
      %c0_9 = arith.constant 0 : index
      %c0_10 = arith.constant 0 : index
      %17 = vector.load %arg5[%c0_8, %c0_9, %c0_10] : memref<1x8x96xbf16, #tpu.memory_space<vmem>>, vector<1x8x96xbf16>
      %18 = vector.shape_cast %17 : vector<1x8x96xbf16> to vector<8x96xbf16>
      %19 = vector.extract_strided_slice %18 {offsets = [0, 32], sizes = [8, 32], strides = [1, 1]} : vector<8x96xbf16> to vector<8x32xbf16>
      %20 = vector.extract_strided_slice %18 {offsets = [0, 64], sizes = [8, 32], strides = [1, 1]} : vector<8x96xbf16> to vector<8x32xbf16>
      %21 = vector.extract_strided_slice %16 {offsets = [0, 0], sizes = [8, 8], strides = [1, 1]} : vector<8x32xbf16> to vector<8x8xbf16>
      %22 = arith.extf %21 : vector<8x8xbf16> to vector<8x8xf32>
      %cst = arith.constant 0.353553385 : f32
      %23 = vector.broadcast %cst : f32 to vector<8x8xf32>
      %24 = arith.mulf %22, %23 : vector<8x8xf32>
      %25 = arith.truncf %24 : vector<8x8xf32> to vector<8x8xbf16>
      %26 = vector.extract_strided_slice %19 {offsets = [0, 0], sizes = [8, 8], strides = [1, 1]} : vector<8x32xbf16> to vector<8x8xbf16>
      %27 = vector.extract_strided_slice %20 {offsets = [0, 0], sizes = [8, 8], strides = [1, 1]} : vector<8x32xbf16> to vector<8x8xbf16>
      %cst_11 = arith.constant dense<0.000000e+00> : vector<8x8xf32>
      %28 = tpu.matmul %25, %26, %cst_11 {dimension_numbers = #tpu.dot_dimension_numbers<[1], [1], [0], [0], [0, 0, 1, 0], [], []>} : vector<8x8xbf16>, vector<8x8xbf16>, vector<8x8xf32> -> vector<8x8xf32>
      %c0_12 = arith.constant 0 : index
      %c0_13 = arith.constant 0 : index
      %c0_14 = arith.constant 0 : index
      %29 = vector.load %arg7[%c0_12, %c0_13, %c0_14] : memref<4x8x1xf32, #tpu.memory_space<vmem>>, vector<1x8x1xf32>
      %30 = vector.shape_cast %29 : vector<1x8x1xf32> to vector<8x1xf32>
      %cst_15 = arith.constant dense<0xFF800000> : vector<8xf32>
      %31 = vector.multi_reduction <maximumf>, %28, %cst_15 [1] : vector<8x8xf32> to vector<8xf32>
      %32 = vector.shape_cast %31 : vector<8xf32> to vector<8x1xf32>
      %33 = arith.maximumf %30, %32 : vector<8x1xf32>
      %34 = arith.subf %30, %33 : vector<8x1xf32>
      %35 = math.exp %34 : vector<8x1xf32>
      %36 = vector.broadcast %33 : vector<8x1xf32> to vector<8x8xf32>
      %37 = arith.subf %28, %36 : vector<8x8xf32>
      %38 = math.exp %37 : vector<8x8xf32>
      %c0_16 = arith.constant 0 : index
      %c0_17 = arith.constant 0 : index
      %c0_18 = arith.constant 0 : index
      %39 = vector.load %arg8[%c0_16, %c0_17, %c0_18] : memref<4x8x1xf32, #tpu.memory_space<vmem>>, vector<1x8x1xf32>
      %40 = vector.shape_cast %39 : vector<1x8x1xf32> to vector<8x1xf32>
      %41 = arith.mulf %35, %40 : vector<8x1xf32>
      %cst_19 = arith.constant dense<0.000000e+00> : vector<8xf32>
      %42 = vector.multi_reduction <add>, %38, %cst_19 [1] : vector<8x8xf32> to vector<8xf32>
      %43 = vector.shape_cast %42 : vector<8xf32> to vector<8x1xf32>
      %44 = arith.addf %41, %43 : vector<8x1xf32>
      %c0_20 = arith.constant 0 : index
      %c0_21 = arith.constant 0 : index
      %c0_22 = arith.constant 0 : index
      %45 = vector.load %arg8[%c0_20, %c0_21, %c0_22] : memref<4x8x1xf32, #tpu.memory_space<vmem>>, vector<1x8x1xf32>
      %46 = vector.shape_cast %45 : vector<1x8x1xf32> to vector<8x1xf32>
      %47 = vector.shape_cast %44 : vector<8x1xf32> to vector<1x8x1xf32>
      tpu.vector_store %arg8[%c0_20, %c0_21, %c0_22], %47 {strides = array<i32>} : memref<4x8x1xf32, #tpu.memory_space<vmem>>, vector<1x8x1xf32>,
      %c0_23 = arith.constant 0 : index
      %c0_24 = arith.constant 0 : index
      %c0_25 = arith.constant 0 : index
      %48 = vector.load %arg9[%c0_23, %c0_24, %c0_25] : memref<4x8x8xf32, #tpu.memory_space<vmem>>, vector<1x8x8xf32>
      %49 = vector.shape_cast %48 : vector<1x8x8xf32> to vector<8x8xf32>
      %50 = vector.broadcast %35 : vector<8x1xf32> to vector<8x8xf32>
      %51 = arith.mulf %50, %49 : vector<8x8xf32>
      %52 = arith.truncf %38 : vector<8x8xf32> to vector<8x8xbf16>
      %cst_26 = arith.constant dense<0.000000e+00> : vector<8x8xf32>
      %53 = tpu.matmul %52, %27, %cst_26 {dimension_numbers = #tpu.dot_dimension_numbers<[1], [0], [0], [1], [0, 0, 1, 1], [], []>} : vector<8x8xbf16>, vector<8x8xbf16>, vector<8x8xf32> -> vector<8x8xf32>
      %54 = arith.addf %51, %53 : vector<8x8xf32>
      %c0_27 = arith.constant 0 : index
      %c0_28 = arith.constant 0 : index
      %c0_29 = arith.constant 0 : index
      %55 = vector.load %arg9[%c0_27, %c0_28, %c0_29] : memref<4x8x8xf32, #tpu.memory_space<vmem>>, vector<1x8x8xf32>
      %56 = vector.shape_cast %55 : vector<1x8x8xf32> to vector<8x8xf32>
      %57 = vector.shape_cast %54 : vector<8x8xf32> to vector<1x8x8xf32>
      tpu.vector_store %arg9[%c0_27, %c0_28, %c0_29], %57 {strides = array<i32>} : memref<4x8x8xf32, #tpu.memory_space<vmem>>, vector<1x8x8xf32>,
      %c0_30 = arith.constant 0 : index
      %c0_31 = arith.constant 0 : index
      %c0_32 = arith.constant 0 : index
      %58 = vector.load %arg7[%c0_30, %c0_31, %c0_32] : memref<4x8x1xf32, #tpu.memory_space<vmem>>, vector<1x8x1xf32>
      %59 = vector.shape_cast %58 : vector<1x8x1xf32> to vector<8x1xf32>
      %60 = vector.shape_cast %33 : vector<8x1xf32> to vector<1x8x1xf32>
      tpu.vector_store %arg7[%c0_30, %c0_31, %c0_32], %60 {strides = array<i32>} : memref<4x8x1xf32, #tpu.memory_space<vmem>>, vector<1x8x1xf32>,
      %61 = vector.extract_strided_slice %16 {offsets = [0, 8], sizes = [8, 8], strides = [1, 1]} : vector<8x32xbf16> to vector<8x8xbf16>
      %62 = arith.extf %61 : vector<8x8xbf16> to vector<8x8xf32>
      %cst_33 = arith.constant 0.353553385 : f32
      %63 = vector.broadcast %cst_33 : f32 to vector<8x8xf32>
      %64 = arith.mulf %62, %63 : vector<8x8xf32>
      %65 = arith.truncf %64 : vector<8x8xf32> to vector<8x8xbf16>
      %66 = vector.extract_strided_slice %19 {offsets = [0, 8], sizes = [8, 8], strides = [1, 1]} : vector<8x32xbf16> to vector<8x8xbf16>
      %67 = vector.extract_strided_slice %20 {offsets = [0, 8], sizes = [8, 8], strides = [1, 1]} : vector<8x32xbf16> to vector<8x8xbf16>
      %cst_34 = arith.constant dense<0.000000e+00> : vector<8x8xf32>
      %68 = tpu.matmul %65, %66, %cst_34 {dimension_numbers = #tpu.dot_dimension_numbers<[1], [1], [0], [0], [0, 0, 1, 0], [], []>} : vector<8x8xbf16>, vector<8x8xbf16>, vector<8x8xf32> -> vector<8x8xf32>
      %c1 = arith.constant 1 : index
      %c0_35 = arith.constant 0 : index
      %c0_36 = arith.constant 0 : index
      %69 = vector.load %arg7[%c1, %c0_35, %c0_36] : memref<4x8x1xf32, #tpu.memory_space<vmem>>, vector<1x8x1xf32>
      %70 = vector.shape_cast %69 : vector<1x8x1xf32> to vector<8x1xf32>
      %cst_37 = arith.constant dense<0xFF800000> : vector<8xf32>
      %71 = vector.multi_reduction <maximumf>, %68, %cst_37 [1] : vector<8x8xf32> to vector<8xf32>
      %72 = vector.shape_cast %71 : vector<8xf32> to vector<8x1xf32>
      %73 = arith.maximumf %70, %72 : vector<8x1xf32>
      %74 = arith.subf %70, %73 : vector<8x1xf32>
      %75 = math.exp %74 : vector<8x1xf32>
      %76 = vector.broadcast %73 : vector<8x1xf32> to vector<8x8xf32>
      %77 = arith.subf %68, %76 : vector<8x8xf32>
      %78 = math.exp %77 : vector<8x8xf32>
      %c1_38 = arith.constant 1 : index
      %c0_39 = arith.constant 0 : index
      %c0_40 = arith.constant 0 : index
      %79 = vector.load %arg8[%c1_38, %c0_39, %c0_40] : memref<4x8x1xf32, #tpu.memory_space<vmem>>, vector<1x8x1xf32>
      %80 = vector.shape_cast %79 : vector<1x8x1xf32> to vector<8x1xf32>
      %81 = arith.mulf %75, %80 : vector<8x1xf32>
      %cst_41 = arith.constant dense<0.000000e+00> : vector<8xf32>
      %82 = vector.multi_reduction <add>, %78, %cst_41 [1] : vector<8x8xf32> to vector<8xf32>
      %83 = vector.shape_cast %82 : vector<8xf32> to vector<8x1xf32>
      %84 = arith.addf %81, %83 : vector<8x1xf32>
      %c1_42 = arith.constant 1 : index
      %c0_43 = arith.constant 0 : index
      %c0_44 = arith.constant 0 : index
      %85 = vector.load %arg8[%c1_42, %c0_43, %c0_44] : memref<4x8x1xf32, #tpu.memory_space<vmem>>, vector<1x8x1xf32>
      %86 = vector.shape_cast %85 : vector<1x8x1xf32> to vector<8x1xf32>
      %87 = vector.shape_cast %84 : vector<8x1xf32> to vector<1x8x1xf32>
      tpu.vector_store %arg8[%c1_42, %c0_43, %c0_44], %87 {strides = array<i32>} : memref<4x8x1xf32, #tpu.memory_space<vmem>>, vector<1x8x1xf32>,
      %c1_45 = arith.constant 1 : index
      %c0_46 = arith.constant 0 : index
      %c0_47 = arith.constant 0 : index
      %88 = vector.load %arg9[%c1_45, %c0_46, %c0_47] : memref<4x8x8xf32, #tpu.memory_space<vmem>>, vector<1x8x8xf32>
      %89 = vector.shape_cast %88 : vector<1x8x8xf32> to vector<8x8xf32>
      %90 = vector.broadcast %75 : vector<8x1xf32> to vector<8x8xf32>
      %91 = arith.mulf %90, %89 : vector<8x8xf32>
      %92 = arith.truncf %78 : vector<8x8xf32> to vector<8x8xbf16>
      %cst_48 = arith.constant dense<0.000000e+00> : vector<8x8xf32>
      %93 = tpu.matmul %92, %67, %cst_48 {dimension_numbers = #tpu.dot_dimension_numbers<[1], [0], [0], [1], [0, 0, 1, 1], [], []>} : vector<8x8xbf16>, vector<8x8xbf16>, vector<8x8xf32> -> vector<8x8xf32>
      %94 = arith.addf %91, %93 : vector<8x8xf32>
      %c1_49 = arith.constant 1 : index
      %c0_50 = arith.constant 0 : index
      %c0_51 = arith.constant 0 : index
      %95 = vector.load %arg9[%c1_49, %c0_50, %c0_51] : memref<4x8x8xf32, #tpu.memory_space<vmem>>, vector<1x8x8xf32>
      %96 = vector.shape_cast %95 : vector<1x8x8xf32> to vector<8x8xf32>
      %97 = vector.shape_cast %94 : vector<8x8xf32> to vector<1x8x8xf32>
      tpu.vector_store %arg9[%c1_49, %c0_50, %c0_51], %97 {strides = array<i32>} : memref<4x8x8xf32, #tpu.memory_space<vmem>>, vector<1x8x8xf32>,
      %c1_52 = arith.constant 1 : index
      %c0_53 = arith.constant 0 : index
      %c0_54 = arith.constant 0 : index
      %98 = vector.load %arg7[%c1_52, %c0_53, %c0_54] : memref<4x8x1xf32, #tpu.memory_space<vmem>>, vector<1x8x1xf32>
      %99 = vector.shape_cast %98 : vector<1x8x1xf32> to vector<8x1xf32>
      %100 = vector.shape_cast %73 : vector<8x1xf32> to vector<1x8x1xf32>
      tpu.vector_store %arg7[%c1_52, %c0_53, %c0_54], %100 {strides = array<i32>} : memref<4x8x1xf32, #tpu.memory_space<vmem>>, vector<1x8x1xf32>,
      %101 = vector.extract_strided_slice %16 {offsets = [0, 16], sizes = [8, 8], strides = [1, 1]} : vector<8x32xbf16> to vector<8x8xbf16>
      %102 = arith.extf %101 : vector<8x8xbf16> to vector<8x8xf32>
      %cst_55 = arith.constant 0.353553385 : f32
      %103 = vector.broadcast %cst_55 : f32 to vector<8x8xf32>
      %104 = arith.mulf %102, %103 : vector<8x8xf32>
      %105 = arith.truncf %104 : vector<8x8xf32> to vector<8x8xbf16>
      %106 = vector.extract_strided_slice %19 {offsets = [0, 16], sizes = [8, 8], strides = [1, 1]} : vector<8x32xbf16> to vector<8x8xbf16>
      %107 = vector.extract_strided_slice %20 {offsets = [0, 16], sizes = [8, 8], strides = [1, 1]} : vector<8x32xbf16> to vector<8x8xbf16>
      %cst_56 = arith.constant dense<0.000000e+00> : vector<8x8xf32>
      %108 = tpu.matmul %105, %106, %cst_56 {dimension_numbers = #tpu.dot_dimension_numbers<[1], [1], [0], [0], [0, 0, 1, 0], [], []>} : vector<8x8xbf16>, vector<8x8xbf16>, vector<8x8xf32> -> vector<8x8xf32>
      %c2 = arith.constant 2 : index
      %c0_57 = arith.constant 0 : index
      %c0_58 = arith.constant 0 : index
      %109 = vector.load %arg7[%c2, %c0_57, %c0_58] : memref<4x8x1xf32, #tpu.memory_space<vmem>>, vector<1x8x1xf32>
      %110 = vector.shape_cast %109 : vector<1x8x1xf32> to vector<8x1xf32>
      %cst_59 = arith.constant dense<0xFF800000> : vector<8xf32>
      %111 = vector.multi_reduction <maximumf>, %108, %cst_59 [1] : vector<8x8xf32> to vector<8xf32>
      %112 = vector.shape_cast %111 : vector<8xf32> to vector<8x1xf32>
      %113 = arith.maximumf %110, %112 : vector<8x1xf32>
      %114 = arith.subf %110, %113 : vector<8x1xf32>
      %115 = math.exp %114 : vector<8x1xf32>
      %116 = vector.broadcast %113 : vector<8x1xf32> to vector<8x8xf32>
      %117 = arith.subf %108, %116 : vector<8x8xf32>
      %118 = math.exp %117 : vector<8x8xf32>
      %c2_60 = arith.constant 2 : index
      %c0_61 = arith.constant 0 : index
      %c0_62 = arith.constant 0 : index
      %119 = vector.load %arg8[%c2_60, %c0_61, %c0_62] : memref<4x8x1xf32, #tpu.memory_space<vmem>>, vector<1x8x1xf32>
      %120 = vector.shape_cast %119 : vector<1x8x1xf32> to vector<8x1xf32>
      %121 = arith.mulf %115, %120 : vector<8x1xf32>
      %cst_63 = arith.constant dense<0.000000e+00> : vector<8xf32>
      %122 = vector.multi_reduction <add>, %118, %cst_63 [1] : vector<8x8xf32> to vector<8xf32>
      %123 = vector.shape_cast %122 : vector<8xf32> to vector<8x1xf32>
      %124 = arith.addf %121, %123 : vector<8x1xf32>
      %c2_64 = arith.constant 2 : index
      %c0_65 = arith.constant 0 : index
      %c0_66 = arith.constant 0 : index
      %125 = vector.load %arg8[%c2_64, %c0_65, %c0_66] : memref<4x8x1xf32, #tpu.memory_space<vmem>>, vector<1x8x1xf32>
      %126 = vector.shape_cast %125 : vector<1x8x1xf32> to vector<8x1xf32>
      %127 = vector.shape_cast %124 : vector<8x1xf32> to vector<1x8x1xf32>
      tpu.vector_store %arg8[%c2_64, %c0_65, %c0_66], %127 {strides = array<i32>} : memref<4x8x1xf32, #tpu.memory_space<vmem>>, vector<1x8x1xf32>,
      %c2_67 = arith.constant 2 : index
      %c0_68 = arith.constant 0 : index
      %c0_69 = arith.constant 0 : index
      %128 = vector.load %arg9[%c2_67, %c0_68, %c0_69] : memref<4x8x8xf32, #tpu.memory_space<vmem>>, vector<1x8x8xf32>
      %129 = vector.shape_cast %128 : vector<1x8x8xf32> to vector<8x8xf32>
      %130 = vector.broadcast %115 : vector<8x1xf32> to vector<8x8xf32>
      %131 = arith.mulf %130, %129 : vector<8x8xf32>
      %132 = arith.truncf %118 : vector<8x8xf32> to vector<8x8xbf16>
      %cst_70 = arith.constant dense<0.000000e+00> : vector<8x8xf32>
      %133 = tpu.matmul %132, %107, %cst_70 {dimension_numbers = #tpu.dot_dimension_numbers<[1], [0], [0], [1], [0, 0, 1, 1], [], []>} : vector<8x8xbf16>, vector<8x8xbf16>, vector<8x8xf32> -> vector<8x8xf32>
      %134 = arith.addf %131, %133 : vector<8x8xf32>
      %c2_71 = arith.constant 2 : index
      %c0_72 = arith.constant 0 : index
      %c0_73 = arith.constant 0 : index
      %135 = vector.load %arg9[%c2_71, %c0_72, %c0_73] : memref<4x8x8xf32, #tpu.memory_space<vmem>>, vector<1x8x8xf32>
      %136 = vector.shape_cast %135 : vector<1x8x8xf32> to vector<8x8xf32>
      %137 = vector.shape_cast %134 : vector<8x8xf32> to vector<1x8x8xf32>
      tpu.vector_store %arg9[%c2_71, %c0_72, %c0_73], %137 {strides = array<i32>} : memref<4x8x8xf32, #tpu.memory_space<vmem>>, vector<1x8x8xf32>,
      %c2_74 = arith.constant 2 : index
      %c0_75 = arith.constant 0 : index
      %c0_76 = arith.constant 0 : index
      %138 = vector.load %arg7[%c2_74, %c0_75, %c0_76] : memref<4x8x1xf32, #tpu.memory_space<vmem>>, vector<1x8x1xf32>
      %139 = vector.shape_cast %138 : vector<1x8x1xf32> to vector<8x1xf32>
      %140 = vector.shape_cast %113 : vector<8x1xf32> to vector<1x8x1xf32>
      tpu.vector_store %arg7[%c2_74, %c0_75, %c0_76], %140 {strides = array<i32>} : memref<4x8x1xf32, #tpu.memory_space<vmem>>, vector<1x8x1xf32>,
      %141 = vector.extract_strided_slice %16 {offsets = [0, 24], sizes = [8, 8], strides = [1, 1]} : vector<8x32xbf16> to vector<8x8xbf16>
      %142 = arith.extf %141 : vector<8x8xbf16> to vector<8x8xf32>
      %cst_77 = arith.constant 0.353553385 : f32
      %143 = vector.broadcast %cst_77 : f32 to vector<8x8xf32>
      %144 = arith.mulf %142, %143 : vector<8x8xf32>
      %145 = arith.truncf %144 : vector<8x8xf32> to vector<8x8xbf16>
      %146 = vector.extract_strided_slice %19 {offsets = [0, 24], sizes = [8, 8], strides = [1, 1]} : vector<8x32xbf16> to vector<8x8xbf16>
      %147 = vector.extract_strided_slice %20 {offsets = [0, 24], sizes = [8, 8], strides = [1, 1]} : vector<8x32xbf16> to vector<8x8xbf16>
      %cst_78 = arith.constant dense<0.000000e+00> : vector<8x8xf32>
      %148 = tpu.matmul %145, %146, %cst_78 {dimension_numbers = #tpu.dot_dimension_numbers<[1], [1], [0], [0], [0, 0, 1, 0], [], []>} : vector<8x8xbf16>, vector<8x8xbf16>, vector<8x8xf32> -> vector<8x8xf32>
      %c3 = arith.constant 3 : index
      %c0_79 = arith.constant 0 : index
      %c0_80 = arith.constant 0 : index
      %149 = vector.load %arg7[%c3, %c0_79, %c0_80] : memref<4x8x1xf32, #tpu.memory_space<vmem>>, vector<1x8x1xf32>
      %150 = vector.shape_cast %149 : vector<1x8x1xf32> to vector<8x1xf32>
      %cst_81 = arith.constant dense<0xFF800000> : vector<8xf32>
      %151 = vector.multi_reduction <maximumf>, %148, %cst_81 [1] : vector<8x8xf32> to vector<8xf32>
      %152 = vector.shape_cast %151 : vector<8xf32> to vector<8x1xf32>
      %153 = arith.maximumf %150, %152 : vector<8x1xf32>
      %154 = arith.subf %150, %153 : vector<8x1xf32>
      %155 = math.exp %154 : vector<8x1xf32>
      %156 = vector.broadcast %153 : vector<8x1xf32> to vector<8x8xf32>
      %157 = arith.subf %148, %156 : vector<8x8xf32>
      %158 = math.exp %157 : vector<8x8xf32>
      %c3_82 = arith.constant 3 : index
      %c0_83 = arith.constant 0 : index
      %c0_84 = arith.constant 0 : index
      %159 = vector.load %arg8[%c3_82, %c0_83, %c0_84] : memref<4x8x1xf32, #tpu.memory_space<vmem>>, vector<1x8x1xf32>
      %160 = vector.shape_cast %159 : vector<1x8x1xf32> to vector<8x1xf32>
      %161 = arith.mulf %155, %160 : vector<8x1xf32>
      %cst_85 = arith.constant dense<0.000000e+00> : vector<8xf32>
      %162 = vector.multi_reduction <add>, %158, %cst_85 [1] : vector<8x8xf32> to vector<8xf32>
      %163 = vector.shape_cast %162 : vector<8xf32> to vector<8x1xf32>
      %164 = arith.addf %161, %163 : vector<8x1xf32>
      %c3_86 = arith.constant 3 : index
      %c0_87 = arith.constant 0 : index
      %c0_88 = arith.constant 0 : index
      %165 = vector.load %arg8[%c3_86, %c0_87, %c0_88] : memref<4x8x1xf32, #tpu.memory_space<vmem>>, vector<1x8x1xf32>
      %166 = vector.shape_cast %165 : vector<1x8x1xf32> to vector<8x1xf32>
      %167 = vector.shape_cast %164 : vector<8x1xf32> to vector<1x8x1xf32>
      tpu.vector_store %arg8[%c3_86, %c0_87, %c0_88], %167 {strides = array<i32>} : memref<4x8x1xf32, #tpu.memory_space<vmem>>, vector<1x8x1xf32>,
      %c3_89 = arith.constant 3 : index
      %c0_90 = arith.constant 0 : index
      %c0_91 = arith.constant 0 : index
      %168 = vector.load %arg9[%c3_89, %c0_90, %c0_91] : memref<4x8x8xf32, #tpu.memory_space<vmem>>, vector<1x8x8xf32>
      %169 = vector.shape_cast %168 : vector<1x8x8xf32> to vector<8x8xf32>
      %170 = vector.broadcast %155 : vector<8x1xf32> to vector<8x8xf32>
      %171 = arith.mulf %170, %169 : vector<8x8xf32>
      %172 = arith.truncf %158 : vector<8x8xf32> to vector<8x8xbf16>
      %cst_92 = arith.constant dense<0.000000e+00> : vector<8x8xf32>
      %173 = tpu.matmul %172, %147, %cst_92 {dimension_numbers = #tpu.dot_dimension_numbers<[1], [0], [0], [1], [0, 0, 1, 1], [], []>} : vector<8x8xbf16>, vector<8x8xbf16>, vector<8x8xf32> -> vector<8x8xf32>
      %174 = arith.addf %171, %173 : vector<8x8xf32>
      %c3_93 = arith.constant 3 : index
      %c0_94 = arith.constant 0 : index
      %c0_95 = arith.constant 0 : index
      %175 = vector.load %arg9[%c3_93, %c0_94, %c0_95] : memref<4x8x8xf32, #tpu.memory_space<vmem>>, vector<1x8x8xf32>
      %176 = vector.shape_cast %175 : vector<1x8x8xf32> to vector<8x8xf32>
      %177 = vector.shape_cast %174 : vector<8x8xf32> to vector<1x8x8xf32>
      tpu.vector_store %arg9[%c3_93, %c0_94, %c0_95], %177 {strides = array<i32>} : memref<4x8x8xf32, #tpu.memory_space<vmem>>, vector<1x8x8xf32>,
      %c3_96 = arith.constant 3 : index
      %c0_97 = arith.constant 0 : index
      %c0_98 = arith.constant 0 : index
      %178 = vector.load %arg7[%c3_96, %c0_97, %c0_98] : memref<4x8x1xf32, #tpu.memory_space<vmem>>, vector<1x8x1xf32>
      %179 = vector.shape_cast %178 : vector<1x8x1xf32> to vector<8x1xf32>
      %180 = vector.shape_cast %153 : vector<8x1xf32> to vector<1x8x1xf32>
      tpu.vector_store %arg7[%c3_96, %c0_97, %c0_98], %180 {strides = array<i32>} : memref<4x8x1xf32, #tpu.memory_space<vmem>>, vector<1x8x1xf32>,
    } else {
    }
    %c0_i32_4 = arith.constant 0 : i32
    %11 = arith.cmpi eq, %arg3, %c0_i32_4 : i32
    %12 = arith.extui %11 : i1 to i32
    %c0_i32_5 = arith.constant 0 : i32
    %13 = arith.cmpi ne, %12, %c0_i32_5 : i32
    scf.if %13 {
      %c0 = arith.constant 0 : index
      %c0_6 = arith.constant 0 : index
      %c0_7 = arith.constant 0 : index
      %14 = vector.load %arg8[%c0, %c0_6, %c0_7] : memref<4x8x1xf32, #tpu.memory_space<vmem>>, vector<1x8x1xf32>
      %15 = vector.shape_cast %14 : vector<1x8x1xf32> to vector<8x1xf32>
      %16 = tpu.reciprocal %15 {approx = true} : vector<8x1xf32> -> vector<8x1xf32>
      %c0_8 = arith.constant 0 : index
      %c0_9 = arith.constant 0 : index
      %c0_10 = arith.constant 0 : index
      %17 = vector.load %arg9[%c0_8, %c0_9, %c0_10] : memref<4x8x8xf32, #tpu.memory_space<vmem>>, vector<1x8x8xf32>
      %18 = vector.shape_cast %17 : vector<1x8x8xf32> to vector<8x8xf32>
      %19 = vector.broadcast %16 : vector<8x1xf32> to vector<8x8xf32>
      %20 = arith.mulf %18, %19 : vector<8x8xf32>
      %c1 = arith.constant 1 : index
      %c0_11 = arith.constant 0 : index
      %c0_12 = arith.constant 0 : index
      %21 = vector.load %arg8[%c1, %c0_11, %c0_12] : memref<4x8x1xf32, #tpu.memory_space<vmem>>, vector<1x8x1xf32>
      %22 = vector.shape_cast %21 : vector<1x8x1xf32> to vector<8x1xf32>
      %23 = tpu.reciprocal %22 {approx = true} : vector<8x1xf32> -> vector<8x1xf32>
      %c1_13 = arith.constant 1 : index
      %c0_14 = arith.constant 0 : index
      %c0_15 = arith.constant 0 : index
      %24 = vector.load %arg9[%c1_13, %c0_14, %c0_15] : memref<4x8x8xf32, #tpu.memory_space<vmem>>, vector<1x8x8xf32>
      %25 = vector.shape_cast %24 : vector<1x8x8xf32> to vector<8x8xf32>
      %26 = vector.broadcast %23 : vector<8x1xf32> to vector<8x8xf32>
      %27 = arith.mulf %25, %26 : vector<8x8xf32>
      %c2 = arith.constant 2 : index
      %c0_16 = arith.constant 0 : index
      %c0_17 = arith.constant 0 : index
      %28 = vector.load %arg8[%c2, %c0_16, %c0_17] : memref<4x8x1xf32, #tpu.memory_space<vmem>>, vector<1x8x1xf32>
      %29 = vector.shape_cast %28 : vector<1x8x1xf32> to vector<8x1xf32>
      %30 = tpu.reciprocal %29 {approx = true} : vector<8x1xf32> -> vector<8x1xf32>
      %c2_18 = arith.constant 2 : index
      %c0_19 = arith.constant 0 : index
      %c0_20 = arith.constant 0 : index
      %31 = vector.load %arg9[%c2_18, %c0_19, %c0_20] : memref<4x8x8xf32, #tpu.memory_space<vmem>>, vector<1x8x8xf32>
      %32 = vector.shape_cast %31 : vector<1x8x8xf32> to vector<8x8xf32>
      %33 = vector.broadcast %30 : vector<8x1xf32> to vector<8x8xf32>
      %34 = arith.mulf %32, %33 : vector<8x8xf32>
      %c3 = arith.constant 3 : index
      %c0_21 = arith.constant 0 : index
      %c0_22 = arith.constant 0 : index
      %35 = vector.load %arg8[%c3, %c0_21, %c0_22] : memref<4x8x1xf32, #tpu.memory_space<vmem>>, vector<1x8x1xf32>
      %36 = vector.shape_cast %35 : vector<1x8x1xf32> to vector<8x1xf32>
      %37 = tpu.reciprocal %36 {approx = true} : vector<8x1xf32> -> vector<8x1xf32>
      %c3_23 = arith.constant 3 : index
      %c0_24 = arith.constant 0 : index
      %c0_25 = arith.constant 0 : index
      %38 = vector.load %arg9[%c3_23, %c0_24, %c0_25] : memref<4x8x8xf32, #tpu.memory_space<vmem>>, vector<1x8x8xf32>
      %39 = vector.shape_cast %38 : vector<1x8x8xf32> to vector<8x8xf32>
      %40 = vector.broadcast %37 : vector<8x1xf32> to vector<8x8xf32>
      %41 = arith.mulf %39, %40 : vector<8x8xf32>
      %42 = tpu.concatenate %20, %27, %34, %41 in 1 : vector<8x8xf32>, vector<8x8xf32>, vector<8x8xf32>, vector<8x8xf32> -> vector<8x32xf32>
      %43 = arith.truncf %42 : vector<8x32xf32> to vector<8x32xbf16>
      %c0_26 = arith.constant 0 : index
      %c0_27 = arith.constant 0 : index
      %c0_28 = arith.constant 0 : index
      %44 = vector.load %arg6[%c0_26, %c0_27, %c0_28] : memref<1x8x32xbf16, #tpu.memory_space<vmem>>, vector<1x8x32xbf16>
      %45 = vector.shape_cast %44 : vector<1x8x32xbf16> to vector<8x32xbf16>
      %46 = vector.shape_cast %43 : vector<8x32xbf16> to vector<1x8x32xbf16>
      tpu.vector_store %arg6[%c0_26, %c0_27, %c0_28], %46 {strides = array<i32>} : memref<1x8x32xbf16, #tpu.memory_space<vmem>>, vector<1x8x32xbf16>,
    } else {
    }
    return
  }
  func.func @transform_0(%arg0: i32, %arg1: i32, %arg2: i32, %arg3: i32) -> (i32, i32, i32) {
    %c0_i32 = arith.constant 0 : i32
    %c0_i32_0 = arith.constant 0 : i32
    return %arg0, %arg2, %c0_i32 : i32, i32, i32
  }
  func.func @transform_1(%arg0: i32, %arg1: i32, %arg2: i32, %arg3: i32) -> (i32, i32, i32) {
    %0 = arith.minsi %arg3, %arg2 : i32
    %c0_i32 = arith.constant 0 : i32
    %c0_i32_0 = arith.constant 0 : i32
    return %arg0, %0, %c0_i32 : i32, i32, i32
  }
  func.func @transform_2(%arg0: i32, %arg1: i32, %arg2: i32, %arg3: i32) -> (i32, i32, i32) {
    %c0_i32 = arith.constant 0 : i32
    %c0_i32_0 = arith.constant 0 : i32
    return %arg0, %arg2, %c0_i32 : i32, i32, i32
  }
}

module attributes {stable_mosaic.version = 11 : i64} {
  func.func @_linear_res_kernel(%arg0: i32, %arg1: i32, %arg2: i32, %arg3: memref<16x128xbf16, #tpu.memory_space<vmem>>, %arg4: memref<128x32xbf16, #tpu.memory_space<vmem>>, %arg5: memref<1x32xf32, #tpu.memory_space<vmem>>, %arg6: memref<16x32xbf16, #tpu.memory_space<vmem>>, %arg7: memref<16x32xbf16, #tpu.memory_space<vmem>>, %arg8: memref<16x32xf32, #tpu.memory_space<vmem>>) attributes {dimension_semantics = [#tpu.dimension_semantics<parallel>, #tpu.dimension_semantics<parallel>, #tpu.dimension_semantics<arbitrary>], iteration_bounds = array<i64: 1, 1, 1>, scalar_prefetch = 0 : i64, scratch_operands = 1 : i64, tpu.core_type = #tpu.core_type<tc>, window_params = [{transform_indices = @transform_0, window_bounds = array<i64: 16, 128>}, {transform_indices = @transform_1, window_bounds = array<i64: 128, 32>}, {transform_indices = @transform_2, window_bounds = array<i64: 1, 32>}, {transform_indices = @transform_3, window_bounds = array<i64: 16, 32>}, {transform_indices = @transform_4, window_bounds = array<i64: 16, 32>}]} {
    %c0_i32 = arith.constant 0 : i32
    %0 = arith.cmpi eq, %arg2, %c0_i32 : i32
    %1 = arith.extui %0 : i1 to i32
    %c0_i32_0 = arith.constant 0 : i32
    %2 = arith.cmpi ne, %1, %c0_i32_0 : i32
    scf.if %2 {
      %cst_10 = arith.constant 0.000000e+00 : f32
      %12 = vector.broadcast %cst_10 : f32 to vector<16x32xf32>
      %c0_11 = arith.constant 0 : index
      %c0_12 = arith.constant 0 : index
      %13 = vector.load %arg8[%c0_11, %c0_12] : memref<16x32xf32, #tpu.memory_space<vmem>>, vector<16x32xf32>
      tpu.vector_store %arg8[%c0_11, %c0_12], %12 {strides = array<i32>} : memref<16x32xf32, #tpu.memory_space<vmem>>, vector<16x32xf32>,
    } else {
    }
    %c0 = arith.constant 0 : index
    %c0_1 = arith.constant 0 : index
    %3 = vector.load %arg8[%c0, %c0_1] : memref<16x32xf32, #tpu.memory_space<vmem>>, vector<16x32xf32>
    %c0_2 = arith.constant 0 : index
    %c0_3 = arith.constant 0 : index
    %4 = vector.load %arg3[%c0_2, %c0_3] : memref<16x128xbf16, #tpu.memory_space<vmem>>, vector<16x128xbf16>
    %c0_4 = arith.constant 0 : index
    %c0_5 = arith.constant 0 : index
    %5 = vector.load %arg4[%c0_4, %c0_5] : memref<128x32xbf16, #tpu.memory_space<vmem>>, vector<128x32xbf16>
    %cst = arith.constant dense<0.000000e+00> : vector<16x32xf32>
    %6 = tpu.matmul %4, %5, %cst {dimension_numbers = #tpu.dot_dimension_numbers<[1], [0], [0], [1], [0, 0, 1, 1], [], []>} : vector<16x128xbf16>, vector<128x32xbf16>, vector<16x32xf32> -> vector<16x32xf32>
    %7 = arith.addf %3, %6 : vector<16x32xf32>
    %c0_6 = arith.constant 0 : index
    %c0_7 = arith.constant 0 : index
    %8 = vector.load %arg8[%c0_6, %c0_7] : memref<16x32xf32, #tpu.memory_space<vmem>>, vector<16x32xf32>
    tpu.vector_store %arg8[%c0_6, %c0_7], %7 {strides = array<i32>} : memref<16x32xf32, #tpu.memory_space<vmem>>, vector<16x32xf32>,
    %c0_i32_8 = arith.constant 0 : i32
    %9 = arith.cmpi eq, %arg2, %c0_i32_8 : i32
    %10 = arith.extui %9 : i1 to i32
    %c0_i32_9 = arith.constant 0 : i32
    %11 = arith.cmpi ne, %10, %c0_i32_9 : i32
    scf.if %11 {
      %c0_10 = arith.constant 0 : index
      %c0_11 = arith.constant 0 : index
      %12 = vector.load %arg8[%c0_10, %c0_11] : memref<16x32xf32, #tpu.memory_space<vmem>>, vector<16x32xf32>
      %c0_12 = arith.constant 0 : index
      %c0_13 = arith.constant 0 : index
      %13 = vector.load %arg5[%c0_12, %c0_13] : memref<1x32xf32, #tpu.memory_space<vmem>>, vector<1x32xf32>
      %14 = vector.broadcast %13 : vector<1x32xf32> to vector<16x32xf32>
      %15 = arith.addf %12, %14 : vector<16x32xf32>
      %c0_14 = arith.constant 0 : index
      %c0_15 = arith.constant 0 : index
      %16 = vector.load %arg6[%c0_14, %c0_15] : memref<16x32xbf16, #tpu.memory_space<vmem>>, vector<16x32xbf16>
      %17 = arith.extf %16 : vector<16x32xbf16> to vector<16x32xf32>
      %18 = arith.addf %15, %17 : vector<16x32xf32>
      %19 = arith.truncf %18 : vector<16x32xf32> to vector<16x32xbf16>
      %c0_16 = arith.constant 0 : index
      %c0_17 = arith.constant 0 : index
      %20 = vector.load %arg7[%c0_16, %c0_17] : memref<16x32xbf16, #tpu.memory_space<vmem>>, vector<16x32xbf16>
      tpu.vector_store %arg7[%c0_16, %c0_17], %19 {strides = array<i32>} : memref<16x32xbf16, #tpu.memory_space<vmem>>, vector<16x32xbf16>,
    } else {
    }
    return
  }
  func.func @transform_0(%arg0: i32, %arg1: i32, %arg2: i32) -> (i32, i32) {
    %c0_i32 = arith.constant 0 : i32
    return %arg0, %arg2 : i32, i32
  }
  func.func @transform_1(%arg0: i32, %arg1: i32, %arg2: i32) -> (i32, i32) {
    %c0_i32 = arith.constant 0 : i32
    return %arg2, %arg1 : i32, i32
  }
  func.func @transform_2(%arg0: i32, %arg1: i32, %arg2: i32) -> (i32, i32) {
    %c0_i32 = arith.constant 0 : i32
    %c0_i32_0 = arith.constant 0 : i32
    return %c0_i32, %arg1 : i32, i32
  }
  func.func @transform_3(%arg0: i32, %arg1: i32, %arg2: i32) -> (i32, i32) {
    %c0_i32 = arith.constant 0 : i32
    return %arg0, %arg1 : i32, i32
  }
  func.func @transform_4(%arg0: i32, %arg1: i32, %arg2: i32) -> (i32, i32) {
    %c0_i32 = arith.constant 0 : i32
    return %arg0, %arg1 : i32, i32
  }
}

module attributes {stable_mosaic.version = 11 : i64} {
  func.func @_ln_linear_kernel(%arg0: i32, %arg1: i32, %arg2: memref<16x32xbf16, #tpu.memory_space<vmem>>, %arg3: memref<1x32xf32, #tpu.memory_space<vmem>>, %arg4: memref<1x32xf32, #tpu.memory_space<vmem>>, %arg5: memref<64x32xbf16, #tpu.memory_space<vmem>>, %arg6: memref<16x64xbf16, #tpu.memory_space<vmem>>, %arg7: memref<16x32xbf16, #tpu.memory_space<vmem>>) attributes {dimension_semantics = [#tpu.dimension_semantics<parallel>, #tpu.dimension_semantics<arbitrary>], iteration_bounds = array<i64: 1, 1>, scalar_prefetch = 0 : i64, scratch_operands = 1 : i64, tpu.core_type = #tpu.core_type<tc>, window_params = [{transform_indices = @transform_0, window_bounds = array<i64: 16, 32>}, {pipeline_mode = #tpu.pipeline_mode<synchronous>, transform_indices = @transform_1, window_bounds = array<i64: 1, 32>}, {pipeline_mode = #tpu.pipeline_mode<synchronous>, transform_indices = @transform_2, window_bounds = array<i64: 1, 32>}, {transform_indices = @transform_3, window_bounds = array<i64: 64, 32>}, {transform_indices = @transform_4, window_bounds = array<i64: 16, 64>}]} {
    %c0_i32 = arith.constant 0 : i32
    %0 = arith.cmpi eq, %arg1, %c0_i32 : i32
    %1 = arith.extui %0 : i1 to i32
    %c0_i32_0 = arith.constant 0 : i32
    %2 = arith.cmpi ne, %1, %c0_i32_0 : i32
    scf.if %2 {
      %c0_6 = arith.constant 0 : index
      %c0_7 = arith.constant 0 : index
      %8 = vector.load %arg2[%c0_6, %c0_7] : memref<16x32xbf16, #tpu.memory_space<vmem>>, vector<16x32xbf16>
      %9 = arith.extf %8 : vector<16x32xbf16> to vector<16x32xf32>
      %cst_8 = arith.constant dense<0.000000e+00> : vector<16xf32>
      %10 = vector.multi_reduction <add>, %9, %cst_8 [1] : vector<16x32xf32> to vector<16xf32>
      %11 = vector.shape_cast %10 : vector<16xf32> to vector<16x1xf32>
      %cst_9 = arith.constant 3.200000e+01 : f32
      %12 = vector.broadcast %cst_9 : f32 to vector<16x1xf32>
      %13 = arith.divf %11, %12 : vector<16x1xf32>
      %14 = vector.broadcast %13 : vector<16x1xf32> to vector<16x32xf32>
      %15 = arith.subf %9, %14 : vector<16x32xf32>
      %16 = arith.mulf %15, %15 : vector<16x32xf32>
      %cst_10 = arith.constant dense<0.000000e+00> : vector<16xf32>
      %17 = vector.multi_reduction <add>, %16, %cst_10 [1] : vector<16x32xf32> to vector<16xf32>
      %18 = vector.shape_cast %17 : vector<16xf32> to vector<16x1xf32>
      %cst_11 = arith.constant 3.200000e+01 : f32
      %19 = vector.broadcast %cst_11 : f32 to vector<16x1xf32>
      %20 = arith.divf %18, %19 : vector<16x1xf32>
      %21 = vector.broadcast %13 : vector<16x1xf32> to vector<16x32xf32>
      %22 = arith.subf %9, %21 : vector<16x32xf32>
      %cst_12 = arith.constant 9.99999974E-6 : f32
      %23 = vector.broadcast %cst_12 : f32 to vector<16x1xf32>
      %24 = arith.addf %20, %23 : vector<16x1xf32>
      %25 = math.rsqrt %24 : vector<16x1xf32>
      %26 = vector.broadcast %25 : vector<16x1xf32> to vector<16x32xf32>
      %27 = arith.mulf %22, %26 : vector<16x32xf32>
      %c0_13 = arith.constant 0 : index
      %c0_14 = arith.constant 0 : index
      %28 = vector.load %arg3[%c0_13, %c0_14] : memref<1x32xf32, #tpu.memory_space<vmem>>, vector<1x32xf32>
      %29 = vector.broadcast %28 : vector<1x32xf32> to vector<16x32xf32>
      %30 = arith.mulf %27, %29 : vector<16x32xf32>
      %c0_15 = arith.constant 0 : index
      %c0_16 = arith.constant 0 : index
      %31 = vector.load %arg4[%c0_15, %c0_16] : memref<1x32xf32, #tpu.memory_space<vmem>>, vector<1x32xf32>
      %32 = vector.broadcast %31 : vector<1x32xf32> to vector<16x32xf32>
      %33 = arith.addf %30, %32 : vector<16x32xf32>
      %34 = arith.truncf %33 : vector<16x32xf32> to vector<16x32xbf16>
      %c0_17 = arith.constant 0 : index
      %c0_18 = arith.constant 0 : index
      %35 = vector.load %arg7[%c0_17, %c0_18] : memref<16x32xbf16, #tpu.memory_space<vmem>>, vector<16x32xbf16>
      tpu.vector_store %arg7[%c0_17, %c0_18], %34 {strides = array<i32>} : memref<16x32xbf16, #tpu.memory_space<vmem>>, vector<16x32xbf16>,
    } else {
    }
    %c0 = arith.constant 0 : index
    %c0_1 = arith.constant 0 : index
    %3 = vector.load %arg7[%c0, %c0_1] : memref<16x32xbf16, #tpu.memory_space<vmem>>, vector<16x32xbf16>
    %c0_2 = arith.constant 0 : index
    %c0_3 = arith.constant 0 : index
    %4 = vector.load %arg5[%c0_2, %c0_3] : memref<64x32xbf16, #tpu.memory_space<vmem>>, vector<64x32xbf16>
    %cst = arith.constant dense<0.000000e+00> : vector<16x64xf32>
    %5 = tpu.matmul %3, %4, %cst {dimension_numbers = #tpu.dot_dimension_numbers<[1], [1], [0], [0], [0, 0, 1, 0], [], []>} : vector<16x32xbf16>, vector<64x32xbf16>, vector<16x64xf32> -> vector<16x64xf32>
    %6 = arith.truncf %5 : vector<16x64xf32> to vector<16x64xbf16>
    %c0_4 = arith.constant 0 : index
    %c0_5 = arith.constant 0 : index
    %7 = vector.load %arg6[%c0_4, %c0_5] : memref<16x64xbf16, #tpu.memory_space<vmem>>, vector<16x64xbf16>
    tpu.vector_store %arg6[%c0_4, %c0_5], %6 {strides = array<i32>} : memref<16x64xbf16, #tpu.memory_space<vmem>>, vector<16x64xbf16>,
    return
  }
  func.func @transform_0(%arg0: i32, %arg1: i32) -> (i32, i32) {
    %c0_i32 = arith.constant 0 : i32
    %c0_i32_0 = arith.constant 0 : i32
    return %arg0, %c0_i32 : i32, i32
  }
  func.func @transform_1(%arg0: i32, %arg1: i32) -> (i32, i32) {
    %c0_i32 = arith.constant 0 : i32
    %c0_i32_0 = arith.constant 0 : i32
    %c0_i32_1 = arith.constant 0 : i32
    return %c0_i32, %c0_i32_0 : i32, i32
  }
  func.func @transform_2(%arg0: i32, %arg1: i32) -> (i32, i32) {
    %c0_i32 = arith.constant 0 : i32
    %c0_i32_0 = arith.constant 0 : i32
    %c0_i32_1 = arith.constant 0 : i32
    return %c0_i32, %c0_i32_0 : i32, i32
  }
  func.func @transform_3(%arg0: i32, %arg1: i32) -> (i32, i32) {
    %c0_i32 = arith.constant 0 : i32
    %c0_i32_0 = arith.constant 0 : i32
    return %arg1, %c0_i32 : i32, i32
  }
  func.func @transform_4(%arg0: i32, %arg1: i32) -> (i32, i32) {
    %c0_i32 = arith.constant 0 : i32
    return %arg0, %arg1 : i32, i32
  }
}

</mosaic_0001>

<bundles_post_ra>
// kernel: _lambda_.14
= control target key start
LH: loop header
LB: loop body
LE: loop exit
PB: predicated region body
PF: predicated region fallthrough
CT: control target
= control target key end

     0   :  { %vm29_vm0 = vcmask 261120   ;;  %v241_v16 = vmov 0.0   ;;  %vm242_vm1 = vmmov 0   ;;  %vm83_vm2 = vcmask 257024   ;;  %s299_s0 = inlined_call_operand.vmem [shape: bf16[16,32], index: 0, kind: input, shape index: {}]   ;;  %s300_s3 = inlined_call_operand.vmem [shape: bf16[32,128], index: 3, kind: input, shape index: {}]   ;;  %s301_s1 = inlined_call_operand.vmem [shape: f32[1,32], index: 1, kind: input, shape index: {}]   ;;  %s302_s2 = inlined_call_operand.vmem [shape: f32[1,32], index: 2, kind: input, shape index: {}]   ;;  %s303_s4 = inlined_call_operand.vmem [shape: f32[1,128], index: 4, kind: input, shape index: {}]   ;;  %s304_s5 = inlined_call_operand.vmem [shape: bf16[16,128], index: 5, kind: output, shape index: {}]  }
   0x1   :  { %v209_v0 = vld [vmem:[%s299_s0] sm:$0xff]   ;;  %v230_v15 = vld [vmem:[%s300_s3 + $0x8] sm:$0xff]   ;;  %220 = vmatprep.subr.bf16.mxu0 %v241_v16  ;;  %224 = vmatprep.mubr.msk.bf16.mxu0 %vm242_vm1, %v241_v16 }
   0x2   :  { %v210_v1 = vunpack.c.l.bf16 %v209_v0  ;;  %v211_v2 = vunpack.c.h.bf16 %v209_v0  ;;  %221 = vmatpush3.bf16.msra.mxu0 %v230_v15  ;;  %v231_v17 = vld [vmem:[%s300_s3] sm:$0xff]  }
   0x3   :  { %222 = vmatprep.subr.bf16.mxu0 %v241_v16  ;;  %v193_v25 = vld [vmem:[%s301_s1] ss:$0 sm:$0xff] }
   0x4   :  { %v30_v3 = vsel %vm29_vm0, %v210_v1, 0.0  ;;  %v33_v4 = vsel %vm29_vm0, %v211_v2, 0.0  ;;  %v194_v27 = vld [vmem:[%s302_s2] ss:$0 sm:$0xff] }
   0x5   :  { %31 = vadd.xlane.f32.xlu0 %v30_v3  ;;  %v197_v37 = vld [vmem:[%s303_s4] ss:$0 sm:$0xff] }
   0x6   :  { %223 = vmatpush3.bf16.msra.mxu0 %v231_v17 }
   0x9   :  { %34 = vadd.xlane.f32.xlu0 %v33_v4 }
  0x8e   :  { %v32_v5 = vpop.xlane.xlu0 %31 }
  0x8f   :  { %v37_v6 = vmul.f32 0.03125, %v32_v5 }
  0x91   :  { %v39_v7 = vsub.f32 %v210_v1, %v37_v6 }
  0x92   :  { %v35_v8 = vpop.xlane.xlu0 %34 }
  0x93   :  { %v38_v9 = vmul.f32 0.03125, %v35_v8  ;;  %v41_v10 = vmul.f32 %v39_v7, %v39_v7 }
  0x95   :  { %v40_v11 = vsub.f32 %v211_v2, %v38_v9  ;;  %v43_v12 = vsel %vm29_vm0, %v41_v10, 0.0 }
  0x96   :  { %44 = vadd.xlane.f32.xlu1 %v43_v12 }
  0x97   :  { %v42_v13 = vmul.f32 %v40_v11, %v40_v11 }
  0x99   :  { %v46_v14 = vsel %vm29_vm0, %v42_v13, 0.0 }
  0x9a   :  { %47 = vadd.xlane.f32.xlu1 %v46_v14 }
 0x11f   :  { %v45_v18 = vpop.xlane.xlu1 %44 }
 0x120   :  { %v49_v19 = vmul.f32 0.03125, %v45_v18 }
 0x122   :  { %v51_v20 = vadd.f32 1e-05, %v49_v19 }
 0x123   :  { %v48_v21 = vpop.xlane.xlu1 %47 }
 0x124   :  { %233 = vrsqrt.f32 %v51_v20  ;;  %v50_v22 = vmul.f32 0.03125, %v48_v21 }
 0x126   :  { %v52_v23 = vadd.f32 1e-05, %v50_v22 }
 0x128   :  { %235 = vrsqrt.f32 %v52_v23 }
 0x131   :  { %v234_v24 = vpop.eup %233 }
 0x132   :  { %v55_v26 = vmul.f32 %v234_v24, %v39_v7 }
 0x134   :  { %v64_v28 = vmul.f32 %v193_v25, %v55_v26 }
 0x135   :  { %v236_v29 = vpop.eup %235 }
 0x136   :  { %v73_v30 = vadd.f32 %v194_v27, %v64_v28  ;;  %v56_v31 = vmul.f32 %v236_v29, %v40_v11 }
 0x138   :  { %v204_v32 = vpack.c.bf16 %v73_v30, %v73_v30  ;;  %v65_v33 = vmul.f32 %v193_v25, %v56_v31 }
 0x13a   :  { %84 = vst.msk [vmem:[#allocation2] sm:$0xf] %vm83_vm2, %v204_v32  ;;  %v74_v34 = vadd.f32 %v194_v27, %v65_v33 }
 0x13c   :  { %v205_v35 = vpack.c.bf16 %v74_v34, %v74_v34 }
 0x13e   :  { %85 = vst.msk [vmem:[#allocation2 + $0x4] sm:$0xf] %vm83_vm2, %v205_v35 }
 0x145   :  { %v232_v36 = vld [vmem:[#allocation2] sm:$0xff]  }
 0x146   :  { %225 = vmatmul.mubr.msk.bf16.vlgmr.msra.gmra.mxu0 %vm29_vm0, %v232_v36 }
 0x206   :  { %v154_v38 = vpop.f32.mrf.mxu0 }
 0x207   :  { %v155_v39 = vadd.f32 %v197_v37, %v154_v38 }
 0x208   :  { %v226_v40 = vpop.f32.mrf.mxu0 }
 0x209   :  { %v163_v41 = vmul.f32 0.044715, %v155_v39  ;;  %v161_v57 = vmul.f32 0.5, %v155_v39 }
 0x20a   :  { %v157_v42 = vpop.f32.mrf.mxu0 }
 0x20b   :  { %v165_v43 = vmul.f32 %v163_v41, %v155_v39  ;;  %v158_v44 = vadd.f32 %v197_v37, %v157_v42 }
 0x20c   :  { %v227_v45 = vpop.f32.mrf.mxu0 }
 0x20d   :  { %v167_v46 = vmul.f32 %v165_v43, %v155_v39  ;;  %v164_v47 = vmul.f32 0.044715, %v158_v44  ;;  %v162_v58 = vmul.f32 0.5, %v158_v44 }
 0x20f   :  { %v169_v48 = vadd.f32 %v167_v46, %v155_v39  ;;  %v166_v49 = vmul.f32 %v164_v47, %v158_v44 }
 0x211   :  { %v171_v50 = vmul.f32 0.7978846, %v169_v48  ;;  %v168_v51 = vmul.f32 %v166_v49, %v158_v44 }
 0x213   :  { %237 = vtanh.f32 %v171_v50  ;;  %v170_v52 = vadd.f32 %v168_v51, %v158_v44 }
 0x215   :  { %v172_v53 = vmul.f32 0.7978846, %v170_v52 }
 0x217   :  { %239 = vtanh.f32 %v172_v53 }
 0x220   :  { %v238_v54 = vpop.eup %237 }
 0x221   :  { %v175_v55 = vadd.f32 1.0, %v238_v54 }
 0x223   :  { %v177_v60 = vmul.f32 %v175_v55, %v161_v57 }
 0x224   :  { %v240_v56 = vpop.eup %239 }
 0x225   :  { %v176_v59 = vadd.f32 1.0, %v240_v56 }
 0x227   :  { %v178_v61 = vmul.f32 %v176_v59, %v162_v58 }
 0x229   :  { %v215_v62 = vpack.c.bf16 %v178_v61, %v177_v60 }
 0x22b   :  { %216 = vst [vmem:[%s304_s5] sm:$0xff] %v215_v62  }

// kernel: _lambda_.11
= control target key start
LH: loop header
LB: loop body
LE: loop exit
PB: predicated region body
PF: predicated region fallthrough
CT: control target
= control target key end

     0   :  { %vm29_vm0 = vcmask 261120   ;;  %v215_v16 = vmov 0.0   ;;  %vm216_vm1 = vmmov 0   ;;  %vm83_vm2 = vcmask 257024   ;;  %s276_s0 = inlined_call_operand.vmem [shape: bf16[16,32], index: 0, kind: input, shape index: {}]   ;;  %s277_s3 = inlined_call_operand.vmem [shape: bf16[32,96], index: 3, kind: input, shape index: {}]   ;;  %s278_s1 = inlined_call_operand.vmem [shape: f32[1,32], index: 1, kind: input, shape index: {}]   ;;  %s279_s2 = inlined_call_operand.vmem [shape: f32[1,32], index: 2, kind: input, shape index: {}]   ;;  %s280_s4 = inlined_call_operand.vmem [shape: f32[1,96], index: 4, kind: input, shape index: {}]   ;;  %s281_s5 = inlined_call_operand.vmem [shape: bf16[16,96], index: 5, kind: output, shape index: {}]  }
   0x1   :  { %v192_v0 = vld [vmem:[%s276_s0] sm:$0xff]   ;;  %v208_v15 = vld [vmem:[%s277_s3 + $0x8] sm:$0xff]   ;;  %198 = vmatprep.subr.bf16.mxu0 %v215_v16  ;;  %202 = vmatprep.mubr.msk.bf16.mxu0 %vm216_vm1, %v215_v16  ;;  %vm169_vm3 = vcmask 781312  }
   0x2   :  { %v193_v1 = vunpack.c.l.bf16 %v192_v0  ;;  %v194_v2 = vunpack.c.h.bf16 %v192_v0  ;;  %199 = vmatpush3.bf16.msra.mxu0 %v208_v15  ;;  %v209_v17 = vld [vmem:[%s277_s3] sm:$0xff]  }
   0x3   :  { %200 = vmatprep.subr.bf16.mxu0 %v215_v16  ;;  %v176_v25 = vld [vmem:[%s278_s1] ss:$0 sm:$0xff] }
   0x4   :  { %v30_v3 = vsel %vm29_vm0, %v193_v1, 0.0  ;;  %v33_v4 = vsel %vm29_vm0, %v194_v2, 0.0  ;;  %v177_v27 = vld [vmem:[%s279_s2] ss:$0 sm:$0xff] }
   0x5   :  { %31 = vadd.xlane.f32.xlu0 %v30_v3  ;;  %v180_v37 = vld [vmem:[%s280_s4] ss:$0 sm:$0xff] }
   0x6   :  { %201 = vmatpush3.bf16.msra.mxu0 %v209_v17 }
   0x9   :  { %34 = vadd.xlane.f32.xlu0 %v33_v4 }
  0x8e   :  { %v32_v5 = vpop.xlane.xlu0 %31 }
  0x8f   :  { %v37_v6 = vmul.f32 0.03125, %v32_v5 }
  0x91   :  { %v39_v7 = vsub.f32 %v193_v1, %v37_v6 }
  0x92   :  { %v35_v8 = vpop.xlane.xlu0 %34 }
  0x93   :  { %v38_v9 = vmul.f32 0.03125, %v35_v8  ;;  %v41_v10 = vmul.f32 %v39_v7, %v39_v7 }
  0x95   :  { %v40_v11 = vsub.f32 %v194_v2, %v38_v9  ;;  %v43_v12 = vsel %vm29_vm0, %v41_v10, 0.0 }
  0x96   :  { %44 = vadd.xlane.f32.xlu1 %v43_v12 }
  0x97   :  { %v42_v13 = vmul.f32 %v40_v11, %v40_v11 }
  0x99   :  { %v46_v14 = vsel %vm29_vm0, %v42_v13, 0.0 }
  0x9a   :  { %47 = vadd.xlane.f32.xlu1 %v46_v14 }
 0x11f   :  { %v45_v18 = vpop.xlane.xlu1 %44 }
 0x120   :  { %v49_v19 = vmul.f32 0.03125, %v45_v18 }
 0x122   :  { %v51_v20 = vadd.f32 1e-05, %v49_v19 }
 0x123   :  { %v48_v21 = vpop.xlane.xlu1 %47 }
 0x124   :  { %211 = vrsqrt.f32 %v51_v20  ;;  %v50_v22 = vmul.f32 0.03125, %v48_v21 }
 0x126   :  { %v52_v23 = vadd.f32 1e-05, %v50_v22 }
 0x128   :  { %213 = vrsqrt.f32 %v52_v23 }
 0x131   :  { %v212_v24 = vpop.eup %211 }
 0x132   :  { %v55_v26 = vmul.f32 %v212_v24, %v39_v7 }
 0x134   :  { %v64_v28 = vmul.f32 %v176_v25, %v55_v26 }
 0x135   :  { %v214_v29 = vpop.eup %213 }
 0x136   :  { %v73_v30 = vadd.f32 %v177_v27, %v64_v28  ;;  %v56_v31 = vmul.f32 %v214_v29, %v40_v11 }
 0x138   :  { %v187_v32 = vpack.c.bf16 %v73_v30, %v73_v30  ;;  %v65_v33 = vmul.f32 %v176_v25, %v56_v31 }
 0x13a   :  { %84 = vst.msk [vmem:[#allocation2] sm:$0xf] %vm83_vm2, %v187_v32  ;;  %v74_v34 = vadd.f32 %v177_v27, %v65_v33 }
 0x13c   :  { %v188_v35 = vpack.c.bf16 %v74_v34, %v74_v34 }
 0x13e   :  { %85 = vst.msk [vmem:[#allocation2 + $0x4] sm:$0xf] %vm83_vm2, %v188_v35 }
 0x145   :  { %v210_v36 = vld [vmem:[#allocation2] sm:$0xff]  }
 0x146   :  { %203 = vmatmul.mubr.msk.bf16.vlgmr.msra.gmra.mxu0 %vm29_vm0, %v210_v36 }
 0x206   :  { %v154_v38 = vpop.f32.mrf.mxu0 }
 0x207   :  { %v155_v39 = vadd.f32 %v180_v37, %v154_v38 }
 0x208   :  { %v204_v40 = vpop.f32.mrf.mxu0 }
 0x209   :  { %v189_v41 = vpack.c.bf16 %v155_v39, %v155_v39 }
 0x20a   :  { %v157_v42 = vpop.f32.mrf.mxu0 }
 0x20b   :  { %170 = vst.msk [vmem:[%s281_s5] sm:$0xf] %vm169_vm3, %v189_v41  ;;  %v158_v43 = vadd.f32 %v180_v37, %v157_v42 }
 0x20c   :  { %v205_v44 = vpop.f32.mrf.mxu0 }
 0x20d   :  { %v190_v45 = vpack.c.bf16 %v158_v43, %v158_v43 }
 0x20f   :  { %171 = vst.msk [vmem:[%s281_s5 + $0x4] sm:$0xf] %vm169_vm3, %v190_v45 }

// kernel: _lambda_.13
= control target key start
LH: loop header
LB: loop body
LE: loop exit
PB: predicated region body
PF: predicated region fallthrough
CT: control target
= control target key end

     0   :  { %vm22_vm0 = vcmask 261120   ;;  %v163_v0 = vmov 0.0   ;;  %vm164_vm1 = vmmov 0   ;;  %vm127_vm2 = vcmask 257024   ;;  %s216_s1 = inlined_call_operand.vmem [shape: bf16[32,32], index: 1, kind: input, shape index: {}]   ;;  %s217_s0 = inlined_call_operand.vmem [shape: bf16[16,32], index: 0, kind: input, shape index: {}]   ;;  %s218_s3 = inlined_call_operand.vmem [shape: bf16[16,32], index: 3, kind: input, shape index: {}]   ;;  %s219_s2 = inlined_call_operand.vmem [shape: f32[1,32], index: 2, kind: input, shape index: {}]   ;;  %s220_s4 = inlined_call_operand.vmem [shape: bf16[16,32], index: 4, kind: output, shape index: {}]  }
   0x1   :  { %150 = vmatprep.subr.bf16.mxu0 %v163_v0  ;;  %v160_v1 = vld [vmem:[%s216_s1 + $0x8] sm:$0xff]   ;;  %154 = vmatprep.mubr.msk.bf16.mxu0 %vm164_vm1, %v163_v0  ;;  %23 = vst.msk [vmem:[#allocation2] sm:$0xff] %vm22_vm0, %v163_v0  ;;  %24 = vst.msk [vmem:[#allocation2 + $0x8] sm:$0xff] %vm22_vm0, %v163_v0  ;;  %v161_v2 = vld [vmem:[%s216_s1] sm:$0xff]  }
   0x2   :  { %151 = vmatpush3.bf16.msra.mxu0 %v160_v1  ;;  %v162_v3 = vld [vmem:[%s217_s0] sm:$0xff]  }
   0x3   :  { %152 = vmatprep.subr.bf16.mxu0 %v163_v0  ;;  %v144_v11 = vld [vmem:[%s218_s3] sm:$0xff]  }
   0x4   :  { %v138_v13 = vld [vmem:[%s219_s2] ss:$0 sm:$0xff]  ;;  %v145_v14 = vunpack.c.l.bf16 %v144_v11  ;;  %v146_v18 = vunpack.c.h.bf16 %v144_v11 }
   0x6   :  { %153 = vmatpush3.bf16.msra.mxu0 %v161_v2 }
   0x8   :  { %v25_v4 = vld [vmem:[#allocation2] sm:$0xff]  ;;  %v26_v8 = vld [vmem:[#allocation2 + $0x8] sm:$0xff] }
   0x9   :  { %155 = vmatmul.mubr.msk.bf16.vlgmr.msra.gmra.mxu0 %vm22_vm0, %v162_v3 }
  0xc9   :  { %v88_v5 = vpop.f32.mrf.mxu0 }
  0xca   :  { %v95_v6 = vadd.f32 %v88_v5, %v25_v4 }
  0xcb   :  { %v156_v7 = vpop.f32.mrf.mxu0 }
  0xcc   :  { %97 = vst.msk [vmem:[#allocation2] sm:$0xff] %vm22_vm0, %v95_v6 }
  0xcd   :  { %v91_v9 = vpop.f32.mrf.mxu0 }
  0xce   :  { %v96_v10 = vadd.f32 %v91_v9, %v26_v8 }
  0xcf   :  { %v157_v12 = vpop.f32.mrf.mxu0 }
  0xd0   :  { %98 = vst.msk [vmem:[#allocation2 + $0x8] sm:$0xff] %vm22_vm0, %v96_v10 }
  0xd3   :  { %v102_v15 = vld [vmem:[#allocation2] sm:$0xff] }
  0xd4   :  { %v111_v16 = vadd.f32 %v138_v13, %v102_v15 }
  0xd6   :  { %v117_v17 = vadd.f32 %v145_v14, %v111_v16 }
  0xd7   :  { %v103_v19 = vld [vmem:[#allocation2 + $0x8] sm:$0xff] }
  0xd8   :  { %v141_v20 = vpack.c.bf16 %v117_v17, %v117_v17  ;;  %v112_v21 = vadd.f32 %v138_v13, %v103_v19 }
  0xda   :  { %128 = vst.msk [vmem:[%s220_s4] sm:$0xf] %vm127_vm2, %v141_v20  ;;  %v118_v22 = vadd.f32 %v146_v18, %v112_v21 }
  0xdc   :  { %v142_v23 = vpack.c.bf16 %v118_v22, %v118_v22 }
  0xde   :  { %129 = vst.msk [vmem:[%s220_s4 + $0x4] sm:$0xf] %vm127_vm2, %v142_v23 }

// kernel: _lambda_.12
= control target key start
LH: loop header
LB: loop body
LE: loop exit
PB: predicated region body
PF: predicated region fallthrough
CT: control target
= control target key end

     0   :  { %s1738_s9 = smov 0   ;;  %s1740_s10 = smov 0   ;;  %s1916_s0 = inlined_call_operand.vmem [shape: bf16[2,8,96], index: 0, kind: input, shape index: {}, may-alias: {0,1}]   ;;  %s1917_s1 = inlined_call_operand.vmem [shape: bf16[2,8,96], index: 1, kind: input, shape index: {}, may-alias: {0,1}]   ;;  %s1918_s2 = inlined_call_operand.vmem [shape: bf16[2,8,32], index: 2, kind: output, shape index: {}]  }
   0x1   :  { %s1742_s11 = smov 0  }
   0x2 LB: > { %s38_s12 = sadd.s32 1, %s1699_s10  ;;  %p1524_p0 = scmp.ge.s32.totalorder %s1703_s11, 1  ;;  %s1703_s11 = sphi %s1742_s11, %s12_s11   ;;  %s1699_s10 = sphi %s1740_s10, %s1920_s10   ;;  %s1695_s9 = sphi %s1738_s9, %s1919_s9  }
   0x3   : > { %p40_p1 = scmp.ge.s32.totalorder %s38_s12, 2  ;;  %p166_p2 = scmp.lt.s32.totalorder %s1703_s11, 3 }
   0x5   : > { %s1922_s12 = smov (%p40_p1, %s38_s12), 0  ;;  %p167_p3 = pnand %p1524_p0, %p166_p2 }
   0x6   : > { %p201_p4 = scmp.lt.s32.totalorder (!%p167_p3), %s1695_s9, 1  ;;  %s1707_s17 = smov (!%p167_p3), 96  }
   0x7   : > { %170 = sbr.rel (%p167_p3) target bundleno = 1527 (0x5f7), region = 28  ;;  %s1710_s21 = smov (!%p167_p3), 64  }
   0x8   : > { %s1711_s22 = smov (!%p167_p3), 88   ;;  %s1712_s23 = smov (!%p167_p3), 120  }
   0x9   : > { %s1713_s24 = smov (!%p167_p3), 80   ;;  %s1714_s25 = smov (!%p167_p3), 112  }
   0xa   : > { %s1715_s26 = smov (!%p167_p3), 72   ;;  %s1716_s27 = smov (!%p167_p3), 104  }
   0xb   : > { %s1717_s28 = smov (!%p167_p3), 56   ;;  %s1718_s29 = smov (!%p167_p3), 40  }
   0xc   : > { %vm242_vm0 = vcmask 64512   ;;  %v1705_v0 = vmov 0.0   ;;  %vm1706_vm1 = vmmov 0   ;;  %s1924_s9 = smov (!%p201_p4, %s1695_s9), 1  ;;  %vm233_vm2 = vcmask 7168   ;;  %s1719_s30 = smov 48  }
   0xd   : > { %1564 = vmatprep.subr.bf16.mxu0 %v1705_v0  ;;  %243 = vst.msk [vmem:[#allocation4] sm:$0xff] %vm242_vm0, %v1705_v0  ;;  %244 = vst.msk [vmem:[#allocation4 + $0x8] sm:$0xff] %vm242_vm0, %v1705_v0  ;;  %1566 = vmatprep.mubr.msk.bf16.mxu0 %vm1706_vm1, %v1705_v0  ;;  %s1770_s13 = sshll.u32 %s1924_s9, 2  ;;  %v1708_v8 = vmov -inf   ;;  %v253_v9 = vlaneseq  ;;  %v1709_v18 = vmov 0   ;;  %vm355_vm4 = vcmask 1043456  }
   0xe   : > { %245 = vst.msk [vmem:[#allocation4 + $0x10] sm:$0xff] %vm242_vm0, %v1705_v0  ;;  %246 = vst.msk [vmem:[#allocation4 + $0x18] sm:$0xff] %vm242_vm0, %v1705_v0  ;;  %1570 = vmatprep.subr.bf16.mxu1 %v1705_v0  ;;  %1572 = vmatprep.mubr.msk.bf16.mxu1 %vm1706_vm1, %v1705_v0  ;;  %s216_s16 = scalar_lea.vmem %s1917_s1, %s1770_s13  ;;  %s207_s20 = scalar_lea.vmem %s1916_s0, %s1770_s13  ;;  %vm1421_vm5 = vcmask 130048   ;;  %vm1423_vm6 = vcmask 195584   ;;  %vm1426_vm7 = vcmask 257024  }
   0xf   : > { %v1776_v1 = vld [vmem:[%s216_s16] ss:$0 sps:$4 sm:$0xff]   ;;  %234 = vst.msk [vmem:[#allocation2] sm:$0xff] %vm233_vm2, %v1708_v8  ;;  %235 = vst.msk [vmem:[#allocation2 + $0x8] sm:$0xff] %vm233_vm2, %v1708_v8  ;;  %v1800_v10 = vshrl.u32 %v253_v9, 7  ;;  %v1802_v11 = vand.u32 127, %v253_v9  ;;  %1654 = vset.pattern.permute.xlu1 %v1709_v18  ;;  %1655 = vset.pattern.permute.xlu0 %v1709_v18  ;;  %s225_s8 = scalar_lea.vmem %s1918_s2, %s1770_s13 }
  0x10   : > { %268 = vrot.lane.b32.xlu0 %v1776_v1, %s1707_s17  ;;  %v251_v2 = vld [vmem:[%s207_s20] sm:$0xf]  ;;  %236 = vst.msk [vmem:[#allocation2 + $0x10] sm:$0xff] %vm233_vm2, %v1708_v8  ;;  %237 = vst.msk [vmem:[#allocation2 + $0x18] sm:$0xff] %vm233_vm2, %v1708_v8  ;;  %s1720_s3 = smov 8   ;;  %s1721_s4 = smov 16  }
  0x11   : > { %v262_v3 = vunpack.c.l.bf16 %v251_v2  ;;  %238 = vst.msk [vmem:[#allocation3] sm:$0xff] %vm233_vm2, %v1705_v0  ;;  %239 = vst.msk [vmem:[#allocation3 + $0x8] sm:$0xff] %vm233_vm2, %v1705_v0  ;;  %vm261_vm3 = vcmp.le.s32.totalorder %v1802_v11, %v1800_v10  ;;  %s1722_s5 = smov 24  }
  0x12   : > { %240 = vst.msk [vmem:[#allocation3 + $0x10] sm:$0xff] %vm233_vm2, %v1705_v0  ;;  %241 = vst.msk [vmem:[#allocation3 + $0x18] sm:$0xff] %vm233_vm2, %v1705_v0 }
  0x13   : > { %v263_v6 = vmul.f32 0.35355338, %v262_v3 }
  0x15   : > { %v264_v7 = vpack.c.bf16 %v263_v6, %v263_v6 }
  0x16   : > { %v1810_v19 = vld [vmem:[#allocation2] sm:$0xff]  ;;  %v1859_v61 = vld [vmem:[#allocation2 + $0x8] sm:$0xff] }
  0x17   : > { %v1864_v3 = vld [vmem:[#allocation2 + $0x10] sm:$0xff] }
  0x82   : > { %v269_v4 = vpop.permute.xlu0 %268 }
  0x83   : > { %v275_v5 = vsel %vm242_vm0, %v269_v4, 0 }
  0x84   : > { %1565 = vmatpush3.bf16.xpose.msra.mxu0 %v275_v5 }
  0x85   : > { %1582 = vmatprep.subr.bf16.mxu0 %v1705_v0 }
  0x8b   : > { %1567 = vmatmul.mubr.msk.bf16.vlgmr.msra.gmra.mxu0 %vm242_vm0, %v264_v7 }
  0x8c   : > { %1584 = vmatprep.mubr.msk.bf16.mxu0 %vm1706_vm1, %v1705_v0 }
 0x14b   : > { %v311_v12 = vpop.f32.mrf.mxu0 }
 0x14c   : > { %v317_v13 = vsel %vm261_vm3, %v311_v12, -inf }
 0x14d   : > { %v1568_v14 = vpop.f32.mrf.mxu0  ;;  %v319_v15 = vsel %vm242_vm0, %v317_v13, -inf }
 0x14e   : > { %320 = vmax.xlane.f32.xlu0 %v319_v15 }
 0x14f   : > { %v314_v16 = vpop.f32.mrf.mxu0 }
 0x151   : > { %v1569_v17 = vpop.f32.mrf.mxu0 }
 0x1d7   : > { %v321_v20 = vpop.xlane.xlu0 %320 }
 0x1d8   : > { %v1813_v21 = vmax.f32 %v1810_v19, %v321_v20 }
 0x1da   : > { %v323_v22 = vsub.f32 %v1810_v19, %v1813_v21  ;;  %401 = vst.msk [vmem:[#allocation2] sm:$0xff] %vm233_vm2, %v1813_v21  ;;  %328 = vperm.xlu1 %1654, %v1813_v21   ;;  %v334_v21 = vld [vmem:[#allocation3] sm:$0xff] }
 0x1de   : > { %350 = vrot.lane.b32.xlu1 %v1776_v1, %s1710_s21 }
 0x1e2   : > { %405 = vrot.lane.b32.xlu1 %v1776_v1, %s1711_s22 }
 0x1e6   : > { %403 = vrot.lane.b32.xlu1 %v264_v7, %s1712_s23 }
 0x1ea   : > { %541 = vrot.lane.b32.xlu1 %v1776_v1, %s1713_s24 }
 0x1ee   : > { %539 = vrot.lane.b32.xlu1 %v264_v7, %s1714_s25 }
 0x1f2   : > { %677 = vrot.lane.b32.xlu1 %v1776_v1, %s1715_s26 }
 0x1f6   : > { %675 = vrot.lane.b32.xlu1 %v264_v7, %s1716_s27  ;;  %v727_v7 = vld [vmem:[#allocation2 + $0x18] sm:$0xff] }
 0x255   : > { %v329_v23 = vpop.permute.xlu1 %328 }
 0x256   : > { %v331_v24 = vsub.f32 %v317_v13, %v329_v23 }
 0x258   : > { %v332_v25 = vmul.f32 1.442695, %v331_v24 }
 0x259   : > { %v351_v26 = vpop.permute.xlu1 %350 }
 0x25a   : > { %1657 = vpow2.f32 %v332_v25  ;;  %v357_v27 = vsel %vm355_vm4, %v351_v26, 0 }
 0x25b   : > { %1571 = vmatpush3.bf16.msra.mxu1 %v357_v27 }
 0x25c   : > { %1576 = vmatprep.subr.bf16.mxu1 %v1705_v0 }
 0x25d   : > { %v406_v28 = vpop.permute.xlu1 %405 }
 0x25e   : > { %v411_v31 = vsel %vm242_vm0, %v406_v28, 0 }
 0x261   : > { %v404_v29 = vpop.permute.xlu1 %403 }
 0x265   : > { %v542_v33 = vpop.permute.xlu1 %541 }
 0x266   : > { %v547_v35 = vsel %vm242_vm0, %v542_v33, 0 }
 0x267   : > { %v1826_v30 = vpop.eup %1657 }
 0x268   : > { %v349_v32 = vpack.c.bf16 %v1826_v30, %v1826_v30  ;;  %v336_v11 = vsel %vm242_vm0, %v1826_v30, 0.0 }
 0x269   : > { %v540_v34 = vpop.permute.xlu1 %539 }
 0x26a   : > { %1573 = vmatmul.mubr.msk.bf16.vlgmr.msra.gmra.mxu1 %vm242_vm0, %v349_v32 }
 0x26b   : > { %1577 = vmatpush3.bf16.xpose.msra.mxu1 %v411_v31  ;;  %1578 = vmatprep.mubr.msk.bf16.mxu1 %vm1706_vm1, %v1705_v0 }
 0x26c   : > { %1588 = vmatprep.subr.bf16.mxu1 %v1705_v0 }
 0x26d   : > { %v678_v36 = vpop.permute.xlu1 %677 }
 0x26e   : > { %v683_v37 = vsel %vm242_vm0, %v678_v36, 0 }
 0x271   : > { %v676_v38 = vpop.permute.xlu1 %675 }
 0x272   : > { %1579 = vmatmul.mubr.msk.bf16.vlgmr.msra.gmra.mxu1 %vm242_vm0, %v404_v29 }
 0x273   : > { %1589 = vmatpush3.bf16.xpose.msra.mxu1 %v547_v35  ;;  %1590 = vmatprep.mubr.msk.bf16.mxu1 %vm1706_vm1, %v1705_v0  ;;  %v324_v35 = vmul.f32 1.442695, %v323_v22 }
 0x274   : > { %1600 = vmatprep.subr.bf16.mxu1 %v1705_v0 }
 0x27a   : > { %1591 = vmatmul.mubr.msk.bf16.vlgmr.msra.gmra.mxu1 %vm242_vm0, %v540_v34 }
 0x27b   : > { %1601 = vmatpush3.bf16.xpose.msra.mxu1 %v683_v37  ;;  %1602 = vmatprep.mubr.msk.bf16.mxu1 %vm1706_vm1, %v1705_v0 }
 0x282   : > { %1603 = vmatmul.mubr.msk.bf16.vlgmr.msra.gmra.mxu1 %vm242_vm0, %v676_v38 }
 0x32a   : > { %v1845_v39 = vpop.f32.mrf.mxu1 }
 0x32c   : > { %v1574_v40 = vpop.f32.mrf.mxu1 }
 0x32e   : > { %v396_v41 = vpop.f32.mrf.mxu1 }
 0x330   : > { %v1575_v42 = vpop.f32.mrf.mxu1 }
 0x332   : > { %v447_v43 = vpop.f32.mrf.mxu1 }
 0x333   : > { %v453_v44 = vsel %vm261_vm3, %v447_v43, -inf }
 0x334   : > { %v1580_v45 = vpop.f32.mrf.mxu1  ;;  %v456_v46 = vsel %vm242_vm0, %v453_v44, -inf }
 0x335   : > { %457 = vmax.xlane.f32.xlu1 %v456_v46 }
 0x336   : > { %v450_v47 = vpop.f32.mrf.mxu1 }
 0x338   : > { %v1581_v48 = vpop.f32.mrf.mxu1 }
 0x33a   : > { %v583_v49 = vpop.f32.mrf.mxu1 }
 0x33b   : > { %v589_v50 = vsel %vm261_vm3, %v583_v49, -inf  ;;  %v472_v49 = vld [vmem:[#allocation3 + $0x8] sm:$0xff] }
 0x33c   : > { %v1592_v51 = vpop.f32.mrf.mxu1  ;;  %v592_v52 = vsel %vm242_vm0, %v589_v50, -inf }
 0x33d   : > { %593 = vmax.xlane.f32.xlu0 %v592_v52 }
 0x33e   : > { %v586_v53 = vpop.f32.mrf.mxu1 }
 0x33f   : > { %v608_v53 = vld [vmem:[#allocation3 + $0x10] sm:$0xff] }
 0x340   : > { %v1593_v54 = vpop.f32.mrf.mxu1 }
 0x342   : > { %v719_v55 = vpop.f32.mrf.mxu1 }
 0x343   : > { %v725_v56 = vsel %vm261_vm3, %v719_v55, -inf }
 0x344   : > { %v1604_v57 = vpop.f32.mrf.mxu1  ;;  %v728_v58 = vsel %vm242_vm0, %v725_v56, -inf }
 0x345   : > { %729 = vmax.xlane.f32.xlu0 %v728_v58  ;;  %v744_v58 = vld [vmem:[#allocation3 + $0x18] sm:$0xff] }
 0x346   : > { %v722_v59 = vpop.f32.mrf.mxu1 }
 0x347   : > { %v342_v59 = vld [vmem:[#allocation4] sm:$0xff] }
 0x348   : > { %v1605_v60 = vpop.f32.mrf.mxu1 }
 0x3be   : > { %v458_v62 = vpop.xlane.xlu1 %457 }
 0x3bf   : > { %v459_v63 = vmax.f32 %v1859_v61, %v458_v62 }
 0x3c1   : > { %v460_v2 = vsub.f32 %v1859_v61, %v459_v63  ;;  %538 = vst.msk [vmem:[#allocation2 + $0x8] sm:$0xff] %vm233_vm2, %v459_v63  ;;  %465 = vperm.xlu0 %1655, %v459_v63  }
 0x3c3   : > { %v461_v37 = vmul.f32 1.442695, %v460_v2 }
 0x3c5   : > { %488 = vrot.lane.b32.xlu0 %v1776_v1, %s1717_s28 }
 0x3c6   : > { %v594_v4 = vpop.xlane.xlu0 %593 }
 0x3c7   : > { %v595_v5 = vmax.f32 %v1864_v3, %v594_v4 }
 0x3c9   : > { %v596_v6 = vsub.f32 %v1864_v3, %v595_v5  ;;  %674 = vst.msk [vmem:[#allocation2 + $0x10] sm:$0xff] %vm233_vm2, %v595_v5  ;;  %601 = vperm.xlu1 %1654, %v595_v5   ;;  %760 = vrot.lane.b32.xlu0 %v1776_v1, %s1718_s29 }
 0x3cb   : > { %v597_v42 = vmul.f32 1.442695, %v596_v6 }
 0x3ce   : > { %v730_v8 = vpop.xlane.xlu0 %729 }
 0x3cf   : > { %v731_v9 = vmax.f32 %v727_v7, %v730_v8 }
 0x3d1   : > { %v732_v10 = vsub.f32 %v727_v7, %v731_v9  ;;  %810 = vst.msk [vmem:[#allocation2 + $0x18] sm:$0xff] %vm233_vm2, %v731_v9  ;;  %737 = vperm.xlu1 %1654, %v731_v9   ;;  %v480_v9 = vld [vmem:[#allocation4 + $0x8] sm:$0xff] }
 0x3d3   : > { %v733_v41 = vmul.f32 1.442695, %v732_v10 }
 0x3d5   : > { %624 = vrot.lane.b32.xlu1 %v1776_v1, %s1719_s30 }
 0x3f9   : > { %337 = vadd.xlane.f32.xlu1 %v336_v11 }
 0x43c   : > { %v466_v12 = vpop.permute.xlu0 %465 }
 0x43d   : > { %v468_v13 = vsub.f32 %v453_v44, %v466_v12 }
 0x43f   : > { %v469_v14 = vmul.f32 1.442695, %v468_v13 }
 0x440   : > { %v489_v15 = vpop.permute.xlu0 %488 }
 0x441   : > { %1659 = vpow2.f32 %v469_v14  ;;  %v494_v16 = vsel %vm355_vm4, %v489_v15, 0 }
 0x442   : > { %1583 = vmatpush3.bf16.msra.mxu0 %v494_v16 }
 0x443   : > { %1594 = vmatprep.subr.bf16.mxu0 %v1705_v0 }
 0x444   : > { %v602_v17 = vpop.permute.xlu1 %601  ;;  %v761_v30 = vpop.permute.xlu0 %760 }
 0x445   : > { %v604_v18 = vsub.f32 %v589_v50, %v602_v17  ;;  %v766_v34 = vsel %vm355_vm4, %v761_v30, 0 }
 0x447   : > { %v605_v20 = vmul.f32 1.442695, %v604_v18 }
 0x449   : > { %1661 = vpow2.f32 %v605_v20 }
 0x44c   : > { %v738_v23 = vpop.permute.xlu1 %737 }
 0x44d   : > { %v740_v1 = vsub.f32 %v725_v56, %v738_v23 }
 0x44e   : > { %v1660_v24 = vpop.eup %1659 }
 0x44f   : > { %v741_v25 = vmul.f32 1.442695, %v740_v1  ;;  %v474_v26 = vsel %vm242_vm0, %v1660_v24, 0.0  ;;  %v487_v27 = vpack.c.bf16 %v1660_v24, %v1660_v24  ;;  %v752_v24 = vld [vmem:[#allocation4 + $0x18] sm:$0xff] }
 0x450   : > { %475 = vadd.xlane.f32.xlu0 %v474_v26  ;;  %v625_v28 = vpop.permute.xlu1 %624 }
 0x451   : > { %1663 = vpow2.f32 %v741_v25  ;;  %1585 = vmatmul.mubr.msk.bf16.vlgmr.msra.gmra.mxu0 %vm242_vm0, %v487_v27  ;;  %v630_v29 = vsel %vm355_vm4, %v625_v28, 0 }
 0x452   : > { %1595 = vmatpush3.bf16.msra.mxu0 %v630_v29  ;;  %1596 = vmatprep.mubr.msk.bf16.mxu0 %vm1706_vm1, %v1705_v0  ;;  %1665 = vpow2.f32 %v324_v35 }
 0x453   : > { %1606 = vmatprep.subr.bf16.mxu0 %v1705_v0  ;;  %1667 = vpow2.f32 %v461_v37 }
 0x454   : > { %1669 = vpow2.f32 %v733_v41 }
 0x455   : > { %1671 = vpow2.f32 %v597_v42 }
 0x456   : > { %v1662_v31 = vpop.eup %1661 }
 0x457   : > { %v610_v32 = vsel %vm242_vm0, %v1662_v31, 0.0  ;;  %v623_v33 = vpack.c.bf16 %v1662_v31, %v1662_v31 }
 0x458   : > { %611 = vadd.xlane.f32.xlu0 %v610_v32 }
 0x459   : > { %1597 = vmatmul.mubr.msk.bf16.vlgmr.msra.gmra.mxu0 %vm242_vm0, %v623_v33 }
 0x45a   : > { %1607 = vmatpush3.bf16.msra.mxu0 %v766_v34  ;;  %1608 = vmatprep.mubr.msk.bf16.mxu0 %vm1706_vm1, %v1705_v0 }
 0x45e   : > { %v1664_v36 = vpop.eup %1663 }
 0x45f   : > { %v746_v38 = vsel %vm242_vm0, %v1664_v36, 0.0  ;;  %v759_v40 = vpack.c.bf16 %v1664_v36, %v1664_v36  ;;  %v1666_v43 = vpop.eup %1665 }
 0x460   : > { %747 = vadd.xlane.f32.xlu1 %v746_v38  ;;  %v1668_v0 = vpop.eup %1667  ;;  %v335_v22 = vmul.f32 %v1666_v43, %v334_v21 }
 0x461   : > { %1609 = vmatmul.mubr.msk.bf16.vlgmr.msra.gmra.mxu0 %vm242_vm0, %v759_v40  ;;  %v1670_v44 = vpop.eup %1669  ;;  %v473_v50 = vmul.f32 %v1668_v0, %v472_v49 }
 0x462   : > { %v1672_v19 = vpop.eup %1671  ;;  %v745_v60 = vmul.f32 %v1670_v44, %v744_v58 }
 0x463   : > { %v609_v54 = vmul.f32 %v1672_v19, %v608_v53 }
 0x46e   : > { %345 = vperm.xlu0 %1655, %v1666_v43  }
 0x471   : > { %483 = vperm.xlu1 %1654, %v1668_v0  }
 0x472   : > { %755 = vperm.xlu0 %1655, %v1670_v44  }
 0x475   : > { %619 = vperm.xlu1 %1654, %v1672_v19  }
 0x482   : > { %v338_v45 = vpop.xlane.xlu1 %337 }
 0x483   : > { %v339_v46 = vadd.f32 %v338_v45, %v335_v22 }
 0x485   : > { %341 = vst.msk [vmem:[#allocation3] sm:$0xff] %vm233_vm2, %v339_v46 }
 0x48c   : > { %v1365_v47 = vld [vmem:[#allocation3] sm:$0xff] }
 0x48d   : > { %1673 = vrcp.f32 %v1365_v47 }
 0x49a   : > { %v1674_v48 = vpop.eup %1673 }
 0x49b   : > { %1370 = vperm.xlu1 %1654, %v1674_v48  }
 0x4d9   : > { %v476_v51 = vpop.xlane.xlu0 %475 }
 0x4da   : > { %v477_v52 = vadd.f32 %v476_v51, %v473_v50 }
 0x4dc   : > { %478 = vst.msk [vmem:[#allocation3 + $0x8] sm:$0xff] %vm233_vm2, %v477_v52 }
 0x4e1   : > { %v612_v55 = vpop.xlane.xlu0 %611 }
 0x4e2   : > { %v613_v56 = vadd.f32 %v612_v55, %v609_v54 }
 0x4e3   : > { %v1375_v57 = vld [vmem:[#allocation3 + $0x8] sm:$0xff] }
 0x4e4   : > { %614 = vst.msk [vmem:[#allocation3 + $0x10] sm:$0xff] %vm233_vm2, %v613_v56  ;;  %1675 = vrcp.f32 %v1375_v57 }
 0x4e9   : > { %v748_v61 = vpop.xlane.xlu1 %747  ;;  %v346_v62 = vpop.permute.xlu0 %345 }
 0x4ea   : > { %v749_v63 = vadd.f32 %v748_v61, %v745_v60  ;;  %v348_v2 = vmul.f32 %v346_v62, %v342_v59 }
 0x4eb   : > { %v1386_v3 = vld [vmem:[#allocation3 + $0x10] sm:$0xff] }
 0x4ec   : > { %750 = vst.msk [vmem:[#allocation3 + $0x18] sm:$0xff] %vm233_vm2, %v749_v63  ;;  %v399_v4 = vadd.f32 %v1845_v39, %v348_v2  ;;  %1677 = vrcp.f32 %v1386_v3  ;;  %v616_v39 = vld [vmem:[#allocation4 + $0x10] sm:$0xff] }
 0x4ed   : > { %v484_v10 = vpop.permute.xlu1 %483  ;;  %v756_v25 = vpop.permute.xlu0 %755 }
 0x4ee   : > { %400 = vst.msk [vmem:[#allocation4] sm:$0xff] %vm242_vm0, %v399_v4  ;;  %v486_v11 = vmul.f32 %v484_v10, %v480_v9  ;;  %v758_v28 = vmul.f32 %v756_v25, %v752_v24 }
 0x4f1   : > { %v1676_v5 = vpop.eup %1675  ;;  %v620_v15 = vpop.permute.xlu1 %619 }
 0x4f2   : > { %1381 = vperm.xlu0 %1655, %v1676_v5   ;;  %v622_v18 = vmul.f32 %v620_v15, %v616_v39 }
 0x4f3   : > { %v1397_v6 = vld [vmem:[#allocation3 + $0x18] sm:$0xff] }
 0x4f4   : > { %1679 = vrcp.f32 %v1397_v6 }
 0x4f5   : > { %v1367_v44 = vld [vmem:[#allocation4] sm:$0xff] }
 0x4f9   : > { %v1678_v7 = vpop.eup %1677 }
 0x4fa   : > { %1392 = vperm.xlu1 %1654, %v1678_v7  }
 0x501   : > { %v1680_v8 = vpop.eup %1679 }
 0x502   : > { %1403 = vperm.xlu0 %1655, %v1680_v8  }
 0x511   : > { %v530_v12 = vpop.f32.mrf.mxu0 }
 0x512   : > { %v536_v13 = vadd.f32 %v530_v12, %v486_v11 }
 0x513   : > { %v1586_v14 = vpop.f32.mrf.mxu0 }
 0x514   : > { %537 = vst.msk [vmem:[#allocation4 + $0x8] sm:$0xff] %vm242_vm0, %v536_v13 }
 0x515   : > { %v533_v16 = vpop.f32.mrf.mxu0 }
 0x516   : > { %v1371_v37 = vpop.permute.xlu1 %1370 }
 0x517   : > { %v1587_v17 = vpop.f32.mrf.mxu0  ;;  %v1373_v21 = vmul.f32 %v1371_v37, %v1367_v44 }
 0x519   : > { %v666_v20 = vpop.f32.mrf.mxu0 }
 0x51a   : > { %v672_v23 = vadd.f32 %v666_v20, %v622_v18 }
 0x51b   : > { %v1598_v1 = vpop.f32.mrf.mxu0  ;;  %v1378_v35 = vld [vmem:[#allocation4 + $0x8] sm:$0xff] }
 0x51c   : > { %673 = vst.msk [vmem:[#allocation4 + $0x10] sm:$0xff] %vm242_vm0, %v672_v23 }
 0x51d   : > { %v669_v26 = vpop.f32.mrf.mxu0 }
 0x51f   : > { %v1599_v27 = vpop.f32.mrf.mxu0 }
 0x521   : > { %v802_v29 = vpop.f32.mrf.mxu0 }
 0x522   : > { %v808_v30 = vadd.f32 %v802_v29, %v758_v28 }
 0x523   : > { %v1610_v31 = vpop.f32.mrf.mxu0  ;;  %v1389_v40 = vld [vmem:[#allocation4 + $0x10] sm:$0xff] }
 0x524   : > { %809 = vst.msk [vmem:[#allocation4 + $0x18] sm:$0xff] %vm242_vm0, %v808_v30 }
 0x525   : > { %v805_v32 = vpop.f32.mrf.mxu0 }
 0x527   : > { %v1611_v33 = vpop.f32.mrf.mxu0 }
 0x52b   : > { %v1400_v43 = vld [vmem:[#allocation4 + $0x18] sm:$0xff] }
 0x56d   : > { %v1382_v34 = vpop.permute.xlu0 %1381 }
 0x56e   : > { %v1384_v36 = vmul.f32 %v1382_v34, %v1378_v35 }
 0x570   : > { %1408 = vrot.lane.b32.xlu1 %v1384_v36, %s1720_s3 }
 0x575   : > { %v1393_v38 = vpop.permute.xlu1 %1392 }
 0x576   : > { %v1395_v41 = vmul.f32 %v1393_v38, %v1389_v40 }
 0x578   : > { %1412 = vrot.lane.b32.xlu0 %v1395_v41, %s1721_s4 }
 0x57d   : > { %v1404_v42 = vpop.permute.xlu0 %1403 }
 0x57e   : > { %v1406_v0 = vmul.f32 %v1404_v42, %v1400_v43 }
 0x580   : > { %1416 = vrot.lane.b32.xlu1 %v1406_v0, %s1722_s5 }
 0x5e2   : > { %v1409_v19 = vpop.permute.xlu1 %1408 }
 0x5e3   : > { %v1420_v45 = vsel %vm242_vm0, %v1373_v21, %v1409_v19 }
 0x5ea   : > { %v1413_v22 = vpop.permute.xlu0 %1412 }
 0x5eb   : > { %v1422_v46 = vsel %vm1421_vm5, %v1420_v45, %v1413_v22 }
 0x5f2   : > { %v1417_v47 = vpop.permute.xlu1 %1416 }
 0x5f3   : > { %v1424_v48 = vsel %vm1423_vm6, %v1422_v46, %v1417_v47 }
 0x5f4   : > { %v1425_v49 = vpack.c.bf16 %v1424_v48, %v1424_v48 }
 0x5f6   : > { %1427 = vst.msk [vmem:[%s225_s8] sm:$0xf] %vm1426_vm7, %v1425_v49 }
 0x5f7 PF: > { %s12_s11 = sadd.s32 1, %s1703_s11   ;;  %s1919_s9 = smov %s1699_s10 }
 0x5f8   : > { %p9_p5 = scmp.ge.s32.totalorder %s12_s11, 4   ;;  %s1920_s10 = smov %s1922_s12 }
 0x5fa   :  { %11 = sbr.rel (!%p9_p5) target bundleno = 2 (0x2), region = 101 }

// kernel: _lambda_.21
= control target key start
LH: loop header
LB: loop body
LE: loop exit
PB: predicated region body
PF: predicated region fallthrough
CT: control target
= control target key end

     0   :  { %vm27_vm0 = vcmask 261120   ;;  %s339_s0 = inlined_call_operand.vmem [shape: bf16[16,32], index: 0, kind: input, shape index: {}]   ;;  %s340_s1 = inlined_call_operand.vmem [shape: f32[1,32], index: 1, kind: input, shape index: {}]   ;;  %s341_s2 = inlined_call_operand.vmem [shape: f32[1,32], index: 2, kind: input, shape index: {}]   ;;  %s342_s3 = inlined_call_operand.vmem [shape: bf16[64,32], index: 3, kind: input, shape index: {}]   ;;  %s343_s4 = inlined_call_operand.hbm [shape: bf16[16,64], index: 4, kind: output, shape index: {}]  }
   0x1   :  { %v220_v0 = vld [vmem:[%s339_s0] sm:$0xff]  }
   0x2   :  { %v221_v1 = vunpack.c.l.bf16 %v220_v0  ;;  %v222_v2 = vunpack.c.h.bf16 %v220_v0 }
   0x4   :  { %v28_v3 = vsel %vm27_vm0, %v221_v1, 0.0 }
   0x5   :  { %9 = vsyncpa [#allocation4], 0  ;;  %29 = vadd.xlane.f32.xlu0 %v28_v3  ;;  %v31_v4 = vsel %vm27_vm0, %v222_v2, 0.0  ;;  %v245_v15 = vld [vmem:[%s342_s3 + $0x18] sm:$0xff]   ;;  %v276_v16 = vmov 0.0   ;;  %v246_v18 = vld [vmem:[%s342_s3 + $0x10] sm:$0xff]  }
   0x6   :  { %228 = vmatprep.subr.bf16.mxu0 %v276_v16  ;;  %v133_v17 = vsel %vm27_vm0, %v245_v15, 0  ;;  %v130_v19 = vsel %vm27_vm0, %v246_v18, 0  ;;  %v247_v20 = vld [vmem:[%s342_s3 + $0x8] sm:$0xff]   ;;  %v248_v22 = vld [vmem:[%s342_s3] sm:$0xff]   ;;  %vm277_vm1 = vmmov 0   ;;  %vm81_vm2 = vcmask 257024  }
   0x7   :  { %229 = vmatpush3.bf16.xpose.msra.mxu0 %v133_v17  ;;  %v127_v21 = vsel %vm27_vm0, %v247_v20, 0  ;;  %v124_v23 = vsel %vm27_vm0, %v248_v22, 0  ;;  %236 = vmatprep.mubr.msk.bf16.mxu0 %vm277_vm1, %v276_v16  ;;  %v203_v31 = vld [vmem:[%s340_s1] ss:$0 sm:$0xff]  ;;  %vm184_vm3 = vcmask 519168   ;;  %s278_s1 = smov [#allocation3]  }
   0x8   :  { %230 = vmatprep.subr.bf16.mxu0 %v276_v16  ;;  %v204_v33 = vld [vmem:[%s341_s2] ss:$0 sm:$0xff]  ;;  %s192_s27 = sshll.u32 %s278_s1, 4  ;;  %s193_s27 = int_to_ptr.vmem [resolvable:$true] %s192_s27 }
   0x9   :  { %32 = vadd.xlane.f32.xlu0 %v31_v4  ;;  %s254_s2 = scalar_lea.vmem %s193_s27, 128  ;;  %p259_p1 = scmp.lt.s32.totalorder %s193_s27, %s193_s27 }
   0xa   :  { %p255_p0 = scmp.ne.s32.totalorder %s193_s27, %s254_s2  ;;  %p260_p2 = scmp.lt.s32.totalorder %s254_s2, %s254_s2 }
   0xc   :  { %p261_p3 = por %p260_p2, %p259_p1 }
   0xe   :  { %p262_p4 = pnand %p261_p3, %p255_p0 }
   0xf   :  { %231 = vmatpush3.bf16.xpose.msra.mxu0 %v130_v19 }
  0x10   :  { %232 = vmatprep.subr.bf16.mxu0 %v276_v16 }
  0x17   :  { %233 = vmatpush3.bf16.xpose.msra.mxu0 %v127_v21 }
  0x18   :  { %234 = vmatprep.subr.bf16.mxu0 %v276_v16 }
  0x1f   :  { %235 = vmatpush3.bf16.xpose.msra.mxu0 %v124_v23 }
  0x8e   :  { %v30_v5 = vpop.xlane.xlu0 %29 }
  0x8f   :  { %v35_v6 = vmul.f32 0.03125, %v30_v5 }
  0x91   :  { %v37_v7 = vsub.f32 %v221_v1, %v35_v6 }
  0x92   :  { %v33_v8 = vpop.xlane.xlu0 %32 }
  0x93   :  { %v36_v9 = vmul.f32 0.03125, %v33_v8  ;;  %v39_v10 = vmul.f32 %v37_v7, %v37_v7 }
  0x95   :  { %v38_v11 = vsub.f32 %v222_v2, %v36_v9  ;;  %v41_v12 = vsel %vm27_vm0, %v39_v10, 0.0 }
  0x96   :  { %42 = vadd.xlane.f32.xlu1 %v41_v12 }
  0x97   :  { %v40_v13 = vmul.f32 %v38_v11, %v38_v11 }
  0x99   :  { %v44_v14 = vsel %vm27_vm0, %v40_v13, 0.0 }
  0x9a   :  { %45 = vadd.xlane.f32.xlu1 %v44_v14 }
 0x11f   :  { %v43_v24 = vpop.xlane.xlu1 %42 }
 0x120   :  { %v47_v25 = vmul.f32 0.03125, %v43_v24 }
 0x122   :  { %v49_v26 = vadd.f32 1e-05, %v47_v25 }
 0x123   :  { %v46_v27 = vpop.xlane.xlu1 %45 }
 0x124   :  { %250 = vrsqrt.f32 %v49_v26  ;;  %v48_v28 = vmul.f32 0.03125, %v46_v27 }
 0x126   :  { %v50_v29 = vadd.f32 1e-05, %v48_v28 }
 0x128   :  { %252 = vrsqrt.f32 %v50_v29 }
 0x131   :  { %v251_v30 = vpop.eup %250 }
 0x132   :  { %v53_v32 = vmul.f32 %v251_v30, %v37_v7 }
 0x134   :  { %v62_v34 = vmul.f32 %v203_v31, %v53_v32 }
 0x135   :  { %v253_v35 = vpop.eup %252 }
 0x136   :  { %v71_v36 = vadd.f32 %v204_v33, %v62_v34  ;;  %v54_v37 = vmul.f32 %v253_v35, %v38_v11 }
 0x138   :  { %v215_v38 = vpack.c.bf16 %v71_v36, %v71_v36  ;;  %v63_v39 = vmul.f32 %v203_v31, %v54_v37 }
 0x13a   :  { %82 = vst.msk [vmem:[#allocation2] sm:$0xf] %vm81_vm2, %v215_v38  ;;  %v72_v40 = vadd.f32 %v204_v33, %v63_v39 }
 0x13c   :  { %v216_v41 = vpack.c.bf16 %v72_v40, %v72_v40 }
 0x13e   :  { %83 = vst.msk [vmem:[#allocation2 + $0x4] sm:$0xf] %vm81_vm2, %v216_v41 }
 0x145   :  { %v249_v42 = vld [vmem:[#allocation2] sm:$0xff]  }
 0x146   :  { %237 = vmatmul.mubr.msk.bf16.vlgmr.msra.gmra.mxu0 %vm27_vm0, %v249_v42 }
 0x206   :  { %v169_v43 = vpop.f32.mrf.mxu0 }
 0x207   :  { %v217_v44 = vpack.c.bf16 %v169_v43, %v169_v43 }
 0x208   :  { %v238_v45 = vpop.f32.mrf.mxu0 }
 0x209   :  { %185 = vst.msk [vmem:[#allocation3] sm:$0xf] %vm184_vm3, %v217_v44 }
 0x20a   :  { %v172_v46 = vpop.f32.mrf.mxu0 }
 0x20b   :  { %v218_v47 = vpack.c.bf16 %v172_v46, %v172_v46 }
 0x20c   :  { %v239_v48 = vpop.f32.mrf.mxu0 }
 0x20d   :  { %186 = vst.msk [vmem:[#allocation3 + $0x4] sm:$0xf] %vm184_vm3, %v218_v47 }
 0x20e   :  { %265 = shalt.err (!%p262_p4)
}
 0x20f   :  { %s279_s28 = smov 64   ;;  %s280_s29 = smov 4  }
 0x210   :  { %198 = dma.vmem_to_hbm [thread:$0]  %s193_s27, 128, %s343_s4, [#allocation4], %s279_s28, %s279_s28, %s280_s29  }
 0x211   :  { %274 = dma.done.wait [#allocation4], 128  }
 0x212   :  { %275 = vsyncadd [#allocation4], 4294967168 }
 0x213   :  { %202 = vsyncpa [#allocation4], 1 }

// kernel: _lambda_.15
= control target key start
LH: loop header
LB: loop body
LE: loop exit
PB: predicated region body
PF: predicated region fallthrough
CT: control target
= control target key end

     0   :  { %vm22_vm0 = vcmask 261120   ;;  %v238_v0 = vmov 0.0   ;;  %vm239_vm1 = vmmov 0   ;;  %vm173_vm2 = vcmask 257024   ;;  %s308_s1 = inlined_call_operand.vmem [shape: bf16[128,32], index: 1, kind: input, shape index: {}]   ;;  %s309_s0 = inlined_call_operand.vmem [shape: bf16[16,128], index: 0, kind: input, shape index: {}]   ;;  %s310_s3 = inlined_call_operand.vmem [shape: bf16[16,32], index: 3, kind: input, shape index: {}]   ;;  %s311_s2 = inlined_call_operand.vmem [shape: f32[1,32], index: 2, kind: input, shape index: {}]   ;;  %s312_s4 = inlined_call_operand.vmem [shape: bf16[16,32], index: 4, kind: output, shape index: {}]  }
   0x1   :  { %207 = vmatprep.subr.bf16.mxu0 %v238_v0  ;;  %v229_v1 = vld [vmem:[%s308_s1 + $0x38] sm:$0xff]   ;;  %223 = vmatprep.mubr.msk.bf16.mxu0 %vm239_vm1, %v238_v0  ;;  %23 = vst.msk [vmem:[#allocation2] sm:$0xff] %vm22_vm0, %v238_v0  ;;  %24 = vst.msk [vmem:[#allocation2 + $0x8] sm:$0xff] %vm22_vm0, %v238_v0  ;;  %v230_v2 = vld [vmem:[%s308_s1 + $0x30] sm:$0xff]  }
   0x2   :  { %208 = vmatpush3.bf16.msra.mxu0 %v229_v1  ;;  %v231_v3 = vld [vmem:[%s308_s1 + $0x28] sm:$0xff]   ;;  %v232_v4 = vld [vmem:[%s308_s1 + $0x20] sm:$0xff]   ;;  %v233_v5 = vld [vmem:[%s308_s1 + $0x18] sm:$0xff]  }
   0x3   :  { %209 = vmatprep.subr.bf16.mxu0 %v238_v0  ;;  %v234_v6 = vld [vmem:[%s308_s1 + $0x10] sm:$0xff]   ;;  %v235_v7 = vld [vmem:[%s308_s1 + $0x8] sm:$0xff]   ;;  %v236_v8 = vld [vmem:[%s308_s1] sm:$0xff]  }
   0x4   :  { %v237_v9 = vld [vmem:[%s309_s0] sm:$0xff]  }
   0x5   :  { %v195_v17 = vld [vmem:[%s310_s3] sm:$0xff]  }
   0x6   :  { %210 = vmatpush3.bf16.msra.mxu0 %v230_v2  ;;  %v189_v19 = vld [vmem:[%s311_s2] ss:$0 sm:$0xff]  ;;  %v196_v20 = vunpack.c.l.bf16 %v195_v17  ;;  %v197_v24 = vunpack.c.h.bf16 %v195_v17 }
   0x7   :  { %211 = vmatprep.subr.bf16.mxu0 %v238_v0 }
   0x8   :  { %v25_v10 = vld [vmem:[#allocation2] sm:$0xff]  ;;  %v26_v14 = vld [vmem:[#allocation2 + $0x8] sm:$0xff] }
   0xa   :  { %212 = vmatpush3.bf16.msra.mxu0 %v231_v3 }
   0xb   :  { %213 = vmatprep.subr.bf16.mxu0 %v238_v0 }
   0xe   :  { %214 = vmatpush3.bf16.msra.mxu0 %v232_v4 }
   0xf   :  { %215 = vmatprep.subr.bf16.mxu0 %v238_v0 }
  0x12   :  { %216 = vmatpush3.bf16.msra.mxu0 %v233_v5 }
  0x13   :  { %217 = vmatprep.subr.bf16.mxu0 %v238_v0 }
  0x16   :  { %218 = vmatpush3.bf16.msra.mxu0 %v234_v6 }
  0x17   :  { %219 = vmatprep.subr.bf16.mxu0 %v238_v0 }
  0x1a   :  { %220 = vmatpush3.bf16.msra.mxu0 %v235_v7 }
  0x1b   :  { %221 = vmatprep.subr.bf16.mxu0 %v238_v0 }
  0x1e   :  { %222 = vmatpush3.bf16.msra.mxu0 %v236_v8 }
  0x21   :  { %224 = vmatmul.mubr.bf16.vlgmr.msra.gmra.mxu0 %v237_v9 }
  0xe1   :  { %v133_v11 = vpop.f32.mrf.mxu0 }
  0xe2   :  { %v140_v12 = vadd.f32 %v133_v11, %v25_v10 }
  0xe3   :  { %v225_v13 = vpop.f32.mrf.mxu0 }
  0xe4   :  { %143 = vst.msk [vmem:[#allocation2] sm:$0xff] %vm22_vm0, %v140_v12 }
  0xe5   :  { %v136_v15 = vpop.f32.mrf.mxu0 }
  0xe6   :  { %v141_v16 = vadd.f32 %v136_v15, %v26_v14 }
  0xe7   :  { %v226_v18 = vpop.f32.mrf.mxu0 }
  0xe8   :  { %144 = vst.msk [vmem:[#allocation2 + $0x8] sm:$0xff] %vm22_vm0, %v141_v16 }
  0xeb   :  { %v148_v21 = vld [vmem:[#allocation2] sm:$0xff] }
  0xec   :  { %v157_v22 = vadd.f32 %v189_v19, %v148_v21 }
  0xee   :  { %v163_v23 = vadd.f32 %v196_v20, %v157_v22 }
  0xef   :  { %v149_v25 = vld [vmem:[#allocation2 + $0x8] sm:$0xff] }
  0xf0   :  { %v192_v26 = vpack.c.bf16 %v163_v23, %v163_v23  ;;  %v158_v27 = vadd.f32 %v189_v19, %v149_v25 }
  0xf2   :  { %174 = vst.msk [vmem:[%s312_s4] sm:$0xf] %vm173_vm2, %v192_v26  ;;  %v164_v28 = vadd.f32 %v197_v24, %v158_v27 }
  0xf4   :  { %v193_v29 = vpack.c.bf16 %v164_v28, %v164_v28 }
  0xf6   :  { %175 = vst.msk [vmem:[%s312_s4 + $0x4] sm:$0xf] %vm173_vm2, %v193_v29 }

</bundles_post_ra>
